<compile_context>
chip_gen: v5e
topology: v5e:2x2
jax: 0.10.0
libtpu: 0.0.40
codegen_flags: <defaults>
</compile_context>

<pallas_src>
import math
import functools

import jax
import jax.numpy as jnp
from jax.experimental import pallas as pl
from jax.experimental.pallas import tpu as pltpu


# ---------------- model hyper-parameters (static) ----------------
NUM_TERMS = 4
NUM_HIDDEN_LAYERS = 2
HIDDEN_SIZE = 32
IN_FEATURES = 2 + 2 * NUM_TERMS          # 10
OUT_FEATURES = 3
OUT_PAD = 8                              # pad output rows to a full sublane tile


def _mlp_kernel(x_ref,        # (3, tb)          transposed input tile
                fconst_ref,   # (2T, 2)          col0 = freq, col1 = phase
                win_ref,      # (H, 2 + 2T + 1)  input weights, bias packed last
                wh_ref,       # (L, H, H + 1)    hidden weights, bias packed last
                wout_ref,     # (OUT_PAD, H + 1) output weights (zero-padded rows)
                o_ref):       # (OUT_PAD, tb)
    T2 = fconst_ref.shape[0]          # 2 * num_terms
    H = win_ref.shape[0]
    L = wh_ref.shape[0]

    x = x_ref[...]                    # (3, tb) f32
    x0 = x[0:1, :]                    # (1, tb)
    x1 = x[1:2, :]                    # (1, tb)
    t = x[2:3, :]                     # (1, tb)

    # Fixed Fourier features on the VPU/EUP:
    #   rows 0..T-1   -> cos(2*pi*k*t)
    #   rows T..2T-1  -> cos(2*pi*(k+1)*t - pi/2) == sin(2*pi*(k+1)*t)
    freq = fconst_ref[:, 0:1]         # (2T, 1)
    phase = fconst_ref[:, 1:2]        # (2T, 1)
    fourier = jnp.cos(freq * t + phase)            # (2T, tb)

    # Input layer: one matmul over the Fourier block + VPU passthrough of x,y.
    win = win_ref[...]                # (H, 2 + 2T + 1)
    w_x = win[:, 0:1]                 # (H, 1)
    w_y = win[:, 1:2]                 # (H, 1)
    w_f = win[:, 2:2 + T2]            # (H, 2T)
    b_in = win[:, 2 + T2:3 + T2]      # (H, 1)

    h = (jnp.dot(w_f, fourier, preferred_element_type=jnp.float32)
         + w_x * x0 + w_y * x1 + b_in)             # (H, tb)
    h = jnp.tanh(h)

    # Hidden tanh layers (static unroll; weights in torch (out, in) layout).
    for l in range(L):
        whl = wh_ref[l]               # (H, H + 1)
        h = jnp.tanh(jnp.dot(whl[:, 0:H], h,
                             preferred_element_type=jnp.float32)
                     + whl[:, H:H + 1])

    # Output layer (no activation); rows 3..7 are the zero padding.
    wout = wout_ref[...]              # (OUT_PAD, H + 1)
    o_ref[...] = (jnp.dot(wout[:, 0:H], h,
                          preferred_element_type=jnp.float32)
                  + wout[:, H:H + 1])


def _pack_params(p):
    """Pack torch-layout parameters into the kernel's fused operands."""
    T = p["fourier_cos_w"].shape[0]
    freq = jnp.concatenate([p["fourier_cos_w"], p["fourier_sin_w"]])     # (2T,)
    phase = jnp.concatenate([jnp.zeros((T,), jnp.float32),
                             jnp.full((T,), -0.5 * math.pi, jnp.float32)])
    fconst = jnp.stack([freq, phase], axis=1)                            # (2T, 2)

    win_aug = jnp.concatenate([p["win"], p["bin"][:, None]], axis=1)     # (H, 2+2T+1)
    wh_aug = jnp.concatenate([p["wh"], p["bh"][:, :, None]], axis=2)     # (L, H, H+1)
    wout_aug = jnp.concatenate([p["wout"], p["bout"][:, None]], axis=1)  # (3, H+1)
    # Zero-pad output rows 3..7 so the final matmul / store is a full sublane tile.
    wout_pad = jnp.zeros((OUT_PAD, wout_aug.shape[1]), jnp.float32)
    wout_pad = wout_pad.at[:OUT_FEATURES].set(wout_aug)                  # (8, H+1)
    return fconst, win_aug, wh_aug, wout_pad


@functools.partial(jax.jit, static_argnames=("tb",))
def prev_ptv_nn_multi_forward(x, params, *, tb=512):
    """x: (N, 3) f32.  params: dict of torch-(out,in)-layout weights."""
    N = x.shape[0]
    T = params["fourier_cos_w"].shape[0]
    H = params["win"].shape[0]
    L = params["wh"].shape[0]
    assert tb % 128 == 0, "batch tile must be a multiple of 128 (lane width)"

    fconst, win_aug, wh_aug, wout_pad = _pack_params(params)

    # Transpose to batch-in-lanes layout and pad the batch to a tile multiple.
    n_tiles = pl.cdiv(N, tb)
    n_pad = n_tiles * tb
    x_t = x.T                                         # (3, N)
    if n_pad != N:
        x_t = jnp.pad(x_t, ((0, 0), (0, n_pad - N)))

    out_t = pl.pallas_call(
        _mlp_kernel,
        out_shape=jax.ShapeDtypeStruct((OUT_PAD, n_pad), jnp.float32),
        grid_spec=pltpu.PrefetchScalarGridSpec(
            num_scalar_prefetch=0,
            grid=(n_tiles,),
            in_specs=[
                pl.BlockSpec((3, tb), lambda i: (0, i)),                 # x_t
                pl.BlockSpec((2 * T, 2), lambda i: (0, 0)),              # fconst
                pl.BlockSpec((H, 3 + 2 * T), lambda i: (0, 0)),          # win_aug
                pl.BlockSpec((L, H, H + 1), lambda i: (0, 0, 0)),        # wh_aug
                pl.BlockSpec((OUT_PAD, H + 1), lambda i: (0, 0)),        # wout_pad
            ],
            out_specs=pl.BlockSpec((OUT_PAD, tb), lambda i: (0, i)),
        ),
        compiler_params=pltpu.CompilerParams(
            dimension_semantics=("parallel",)),
    )(x_t, fconst, win_aug, wh_aug, wout_pad)

    return out_t[:OUT_FEATURES, :N].T                 # (N, 3)


def make_params(key):
    """Deterministic parameter init. Linear weights stored torch-style (out, in)."""
    ks = jax.random.split(key, 6)

    # Fixed Fourier weights (exactly as in the torch __init__).
    t_idx = jnp.arange(NUM_TERMS, dtype=jnp.float32)
    fourier_cos_w = 2.0 * t_idx * math.pi                    # (T,)
    fourier_sin_w = 2.0 * (t_idx + 1.0) * math.pi            # (T,)

    def uinit(k, shape, fan_in):
        bound = 1.0 / math.sqrt(fan_in)
        return jax.random.uniform(k, shape, jnp.float32, -bound, bound)

    win = uinit(ks[0], (HIDDEN_SIZE, IN_FEATURES), IN_FEATURES)
    bin_ = uinit(ks[1], (HIDDEN_SIZE,), IN_FEATURES)
    wh = uinit(ks[2], (NUM_HIDDEN_LAYERS, HIDDEN_SIZE, HIDDEN_SIZE), HIDDEN_SIZE)
    bh = uinit(ks[3], (NUM_HIDDEN_LAYERS, HIDDEN_SIZE), HIDDEN_SIZE)
    wout = uinit(ks[4], (OUT_FEATURES, HIDDEN_SIZE), HIDDEN_SIZE)
    bout = uinit(ks[5], (OUT_FEATURES,), HIDDEN_SIZE)

    return dict(fourier_cos_w=fourier_cos_w, fourier_sin_w=fourier_sin_w,
                win=win, bin=bin_, wh=wh, bh=bh, wout=wout, bout=bout)


def reference_forward(x, p):
    """Pure-JAX reference mirroring the torch forward (row-major layout)."""
    t = x[:, 2:3]                                            # (N, 1)
    fc = jnp.cos(t * p["fourier_cos_w"][None, :])            # Linear(1, T, bias=False)
    fs = jnp.sin(t * p["fourier_sin_w"][None, :])
    h = jnp.concatenate([x[:, 0:2], fc, fs], axis=1)
    h = jnp.tanh(h @ p["win"].T + p["bin"])
    for l in range(p["wh"].shape[0]):
        h = jnp.tanh(h @ p["wh"][l].T + p["bh"][l])
    return h @ p["wout"].T + p["bout"]


if __name__ == "__main__":
    key = jax.random.PRNGKey(0)
    k_x, k_p = jax.random.split(key)

    N = 1000   # not a multiple of the tile -> exercises the padding path
    x = jax.random.uniform(k_x, (N, 3), jnp.float32)   # rows are [y0, y1, t]
    params = make_params(k_p)

    out = prev_ptv_nn_multi_forward(x, params, tb=512)
    out = jax.block_until_ready(out)

    ref = reference_forward(x, params)
    assert out.shape == (N, OUT_FEATURES)
    assert jnp.allclose(out, ref, atol=1e-3, rtol=1e-3), "mismatch vs reference"

    print("KERNEL_OK")
</pallas_src>

<mosaic_0001>
module attributes {stable_mosaic.version = 11 : i64} {
  func.func @_mlp_kernel(%arg0: i32, %arg1: memref<3x512xf32, #tpu.memory_space<vmem>>, %arg2: memref<8x2xf32, #tpu.memory_space<vmem>>, %arg3: memref<32x11xf32, #tpu.memory_space<vmem>>, %arg4: memref<2x32x33xf32, #tpu.memory_space<vmem>>, %arg5: memref<8x33xf32, #tpu.memory_space<vmem>>, %arg6: memref<8x512xf32, #tpu.memory_space<vmem>>) attributes {dimension_semantics = [#tpu.dimension_semantics<parallel>], iteration_bounds = array<i64: 2>, scalar_prefetch = 0 : i64, scratch_operands = 0 : i64, tpu.core_type = #tpu.core_type<tc>, window_params = [{transform_indices = @transform_0, window_bounds = array<i64: 3, 512>}, {pipeline_mode = #tpu.pipeline_mode<synchronous>, transform_indices = @transform_1, window_bounds = array<i64: 8, 2>}, {pipeline_mode = #tpu.pipeline_mode<synchronous>, transform_indices = @transform_2, window_bounds = array<i64: 32, 11>}, {pipeline_mode = #tpu.pipeline_mode<synchronous>, transform_indices = @transform_3, window_bounds = array<i64: 2, 32, 33>}, {pipeline_mode = #tpu.pipeline_mode<synchronous>, transform_indices = @transform_4, window_bounds = array<i64: 8, 33>}, {transform_indices = @transform_5, window_bounds = array<i64: 8, 512>}]} {
    %c0 = arith.constant 0 : index
    %c0_0 = arith.constant 0 : index
    %0 = vector.load %arg1[%c0, %c0_0] : memref<3x512xf32, #tpu.memory_space<vmem>>, vector<3x512xf32>
    %1 = vector.extract_strided_slice %0 {offsets = [0, 0], sizes = [1, 512], strides = [1, 1]} : vector<3x512xf32> to vector<1x512xf32>
    %2 = vector.extract_strided_slice %0 {offsets = [1, 0], sizes = [1, 512], strides = [1, 1]} : vector<3x512xf32> to vector<1x512xf32>
    %3 = vector.extract_strided_slice %0 {offsets = [2, 0], sizes = [1, 512], strides = [1, 1]} : vector<3x512xf32> to vector<1x512xf32>
    %c0_1 = arith.constant 0 : index
    %c0_2 = arith.constant 0 : index
    %4 = vector.load %arg2[%c0_1, %c0_2] : memref<8x2xf32, #tpu.memory_space<vmem>>, vector<8x1xf32>
    %c0_3 = arith.constant 0 : index
    %c1 = arith.constant 1 : index
    %5 = vector.load %arg2[%c0_3, %c1] : memref<8x2xf32, #tpu.memory_space<vmem>>, vector<8x1xf32>
    %6 = vector.broadcast %4 : vector<8x1xf32> to vector<8x512xf32>
    %7 = vector.broadcast %3 : vector<1x512xf32> to vector<8x512xf32>
    %8 = arith.mulf %6, %7 : vector<8x512xf32>
    %9 = vector.broadcast %5 : vector<8x1xf32> to vector<8x512xf32>
    %10 = arith.addf %8, %9 : vector<8x512xf32>
    %11 = math.cos %10 : vector<8x512xf32>
    %c0_4 = arith.constant 0 : index
    %c0_5 = arith.constant 0 : index
    %12 = vector.load %arg3[%c0_4, %c0_5] : memref<32x11xf32, #tpu.memory_space<vmem>>, vector<32x11xf32>
    %13 = vector.extract_strided_slice %12 {offsets = [0, 0], sizes = [32, 1], strides = [1, 1]} : vector<32x11xf32> to vector<32x1xf32>
    %14 = vector.extract_strided_slice %12 {offsets = [0, 1], sizes = [32, 1], strides = [1, 1]} : vector<32x11xf32> to vector<32x1xf32>
    %15 = vector.extract_strided_slice %12 {offsets = [0, 2], sizes = [32, 8], strides = [1, 1]} : vector<32x11xf32> to vector<32x8xf32>
    %16 = vector.extract_strided_slice %12 {offsets = [0, 10], sizes = [32, 1], strides = [1, 1]} : vector<32x11xf32> to vector<32x1xf32>
    %cst = arith.constant dense<0.000000e+00> : vector<32x512xf32>
    %17 = tpu.matmul %15, %11, %cst {dimension_numbers = #tpu.dot_dimension_numbers<[1], [0], [0], [1], [0, 0, 1, 1], [], []>} : vector<32x8xf32>, vector<8x512xf32>, vector<32x512xf32> -> vector<32x512xf32>
    %18 = vector.broadcast %13 : vector<32x1xf32> to vector<32x512xf32>
    %19 = vector.broadcast %1 : vector<1x512xf32> to vector<32x512xf32>
    %20 = arith.mulf %18, %19 : vector<32x512xf32>
    %21 = arith.addf %17, %20 : vector<32x512xf32>
    %22 = vector.broadcast %14 : vector<32x1xf32> to vector<32x512xf32>
    %23 = vector.broadcast %2 : vector<1x512xf32> to vector<32x512xf32>
    %24 = arith.mulf %22, %23 : vector<32x512xf32>
    %25 = arith.addf %21, %24 : vector<32x512xf32>
    %26 = vector.broadcast %16 : vector<32x1xf32> to vector<32x512xf32>
    %27 = arith.addf %25, %26 : vector<32x512xf32>
    %28 = math.tanh %27 : vector<32x512xf32>
    %c0_6 = arith.constant 0 : index
    %c0_7 = arith.constant 0 : index
    %c0_8 = arith.constant 0 : index
    %29 = vector.load %arg4[%c0_6, %c0_7, %c0_8] : memref<2x32x33xf32, #tpu.memory_space<vmem>>, vector<1x32x33xf32>
    %30 = vector.shape_cast %29 : vector<1x32x33xf32> to vector<32x33xf32>
    %31 = vector.extract_strided_slice %30 {offsets = [0, 0], sizes = [32, 32], strides = [1, 1]} : vector<32x33xf32> to vector<32x32xf32>
    %cst_9 = arith.constant dense<0.000000e+00> : vector<32x512xf32>
    %32 = tpu.matmul %31, %28, %cst_9 {dimension_numbers = #tpu.dot_dimension_numbers<[1], [0], [0], [1], [0, 0, 1, 1], [], []>} : vector<32x32xf32>, vector<32x512xf32>, vector<32x512xf32> -> vector<32x512xf32>
    %33 = vector.extract_strided_slice %30 {offsets = [0, 32], sizes = [32, 1], strides = [1, 1]} : vector<32x33xf32> to vector<32x1xf32>
    %34 = vector.broadcast %33 : vector<32x1xf32> to vector<32x512xf32>
    %35 = arith.addf %32, %34 : vector<32x512xf32>
    %36 = math.tanh %35 : vector<32x512xf32>
    %c1_10 = arith.constant 1 : index
    %c0_11 = arith.constant 0 : index
    %c0_12 = arith.constant 0 : index
    %37 = vector.load %arg4[%c1_10, %c0_11, %c0_12] : memref<2x32x33xf32, #tpu.memory_space<vmem>>, vector<1x32x33xf32>
    %38 = vector.shape_cast %37 : vector<1x32x33xf32> to vector<32x33xf32>
    %39 = vector.extract_strided_slice %38 {offsets = [0, 0], sizes = [32, 32], strides = [1, 1]} : vector<32x33xf32> to vector<32x32xf32>
    %cst_13 = arith.constant dense<0.000000e+00> : vector<32x512xf32>
    %40 = tpu.matmul %39, %36, %cst_13 {dimension_numbers = #tpu.dot_dimension_numbers<[1], [0], [0], [1], [0, 0, 1, 1], [], []>} : vector<32x32xf32>, vector<32x512xf32>, vector<32x512xf32> -> vector<32x512xf32>
    %41 = vector.extract_strided_slice %38 {offsets = [0, 32], sizes = [32, 1], strides = [1, 1]} : vector<32x33xf32> to vector<32x1xf32>
    %42 = vector.broadcast %41 : vector<32x1xf32> to vector<32x512xf32>
    %43 = arith.addf %40, %42 : vector<32x512xf32>
    %44 = math.tanh %43 : vector<32x512xf32>
    %c0_14 = arith.constant 0 : index
    %c0_15 = arith.constant 0 : index
    %45 = vector.load %arg5[%c0_14, %c0_15] : memref<8x33xf32, #tpu.memory_space<vmem>>, vector<8x33xf32>
    %46 = vector.extract_strided_slice %45 {offsets = [0, 0], sizes = [8, 32], strides = [1, 1]} : vector<8x33xf32> to vector<8x32xf32>
    %cst_16 = arith.constant dense<0.000000e+00> : vector<8x512xf32>
    %47 = tpu.matmul %46, %44, %cst_16 {dimension_numbers = #tpu.dot_dimension_numbers<[1], [0], [0], [1], [0, 0, 1, 1], [], []>} : vector<8x32xf32>, vector<32x512xf32>, vector<8x512xf32> -> vector<8x512xf32>
    %48 = vector.extract_strided_slice %45 {offsets = [0, 32], sizes = [8, 1], strides = [1, 1]} : vector<8x33xf32> to vector<8x1xf32>
    %49 = vector.broadcast %48 : vector<8x1xf32> to vector<8x512xf32>
    %50 = arith.addf %47, %49 : vector<8x512xf32>
    %c0_17 = arith.constant 0 : index
    %c0_18 = arith.constant 0 : index
    %51 = vector.load %arg6[%c0_17, %c0_18] : memref<8x512xf32, #tpu.memory_space<vmem>>, vector<8x512xf32>
    tpu.vector_store %arg6[%c0_17, %c0_18], %50 {strides = array<i32>} : memref<8x512xf32, #tpu.memory_space<vmem>>, vector<8x512xf32>,
    return
  }
  func.func @transform_0(%arg0: i32) -> (i32, i32) {
    %c0_i32 = arith.constant 0 : i32
    %c0_i32_0 = arith.constant 0 : i32
    return %c0_i32, %arg0 : i32, i32
  }
  func.func @transform_1(%arg0: i32) -> (i32, i32) {
    %c0_i32 = arith.constant 0 : i32
    %c0_i32_0 = arith.constant 0 : i32
    %c0_i32_1 = arith.constant 0 : i32
    return %c0_i32, %c0_i32_0 : i32, i32
  }
  func.func @transform_2(%arg0: i32) -> (i32, i32) {
    %c0_i32 = arith.constant 0 : i32
    %c0_i32_0 = arith.constant 0 : i32
    %c0_i32_1 = arith.constant 0 : i32
    return %c0_i32, %c0_i32_0 : i32, i32
  }
  func.func @transform_3(%arg0: i32) -> (i32, i32, i32) {
    %c0_i32 = arith.constant 0 : i32
    %c0_i32_0 = arith.constant 0 : i32
    %c0_i32_1 = arith.constant 0 : i32
    %c0_i32_2 = arith.constant 0 : i32
    return %c0_i32, %c0_i32_0, %c0_i32_1 : i32, i32, i32
  }
  func.func @transform_4(%arg0: i32) -> (i32, i32) {
    %c0_i32 = arith.constant 0 : i32
    %c0_i32_0 = arith.constant 0 : i32
    %c0_i32_1 = arith.constant 0 : i32
    return %c0_i32, %c0_i32_0 : i32, i32
  }
  func.func @transform_5(%arg0: i32) -> (i32, i32) {
    %c0_i32 = arith.constant 0 : i32
    %c0_i32_0 = arith.constant 0 : i32
    return %c0_i32, %arg0 : i32, i32
  }
}

</mosaic_0001>

<bundles_post_ra>
// kernel: prev_ptv_nn_multi_forward.1
= control target key start
LH: loop header
LB: loop body
LE: loop exit
PB: predicated region body
PF: predicated region fallthrough
CT: control target
= control target key end

     0   :  { %s1911_s18 = smov 0   ;;  %s2674_s0 = inlined_call_operand.vmem [shape: f32[3,1024], index: 0, kind: input, shape index: {}]   ;;  %s2675_s1 = inlined_call_operand.vmem [shape: f32[8,2], index: 1, kind: input, shape index: {}]   ;;  %s2676_s2 = inlined_call_operand.vmem [shape: f32[32,11], index: 2, kind: input, shape index: {}]   ;;  %s2677_s3 = inlined_call_operand.vmem [shape: f32[2,32,33], index: 3, kind: input, shape index: {}]   ;;  %s2678_s4 = inlined_call_operand.vmem [shape: f32[8,33], index: 4, kind: input, shape index: {}]   ;;  %s2679_s5 = inlined_call_operand.vmem [shape: f32[8,1024], index: 5, kind: output, shape index: {}]  }
   0x1 LB: > { %s1649_s19 = sadd.s32 4294967295, %s1868_s18   ;;  %p1653_p0 = scmp.ge.s32.totalorder %s1868_s18, 1  ;;  %s1868_s18 = sphi %s1911_s18, %s15_s18  }
   0x2   : > { %p188_p1 = scmp.lt.s32.totalorder %s1868_s18, 3 }
   0x4   : > { %p189_p2 = pnand %p1653_p0, %p188_p1 }
   0x5   : > { %s1871_s24 = smov (!%p189_p2), 126   ;;  %s1654_s29 = sshll.u32 (!%p189_p2), %s1649_s19, 2 }
   0x6   : > { %192 = sbr.rel (%p189_p2) target bundleno = 984 (0x3d8), region = 40  ;;  %p217_p3 = scmp.lt.s32.totalorder (!%p189_p2), %s1654_s29, 7 }
   0xb   : > { %v230_v0 = vld [vmem:[%s2675_s1] sm:$0xff]  ;;  %v1870_v2 = vmov 0   ;;  %v1872_v3 = vmov 1   ;;  %v881_v4 = vld [vmem:[%s2676_s2 + $0x18] sm:$0xff]  ;;  %v879_v5 = vld [vmem:[%s2676_s2 + $0x8] sm:$0xff]  ;;  %s2689_s29 = smov (!%p217_p3, %s1654_s29), 7 }
   0xc   : > { %v878_v1 = vld [vmem:[%s2676_s2] sm:$0xff]  ;;  %1747 = vset.pattern.permute.xlu0 %v1870_v2  ;;  %1749 = vset.pattern.permute.xlu1 %v1870_v2  ;;  %s1655_s30 = sshll.u32 %s2689_s29, 2  ;;  %v880_v6 = vld [vmem:[%s2676_s2 + $0x10] sm:$0xff]  ;;  %v1873_v55 = vmov 683565275   ;;  %s1657_s14 = sshll.u32 %s2689_s29, 3 }
   0xd   : > { %930 = vrot.lane.b32.xlu1 %v878_v1, %s1871_s24  ;;  %233 = vperm.xlu0 %1747, %v230_v0   ;;  %s1946_s10 = scalar_lea.vmem %s2674_s0, %s1655_s30  ;;  %v1874_v57 = vmov 2475754826   ;;  %v1875_v60 = vmov 2131351028   ;;  %v1876_v63 = vmov 2102212464   ;;  %s226_s17 = scalar_lea.vmem %s2679_s5, %s1657_s14 }
   0xe   : > { %1750 = vset.pattern.permute.xlu2 %v1870_v2  ;;  %v228_v7 = vld [vmem:[%s1946_s10] sm:$0x77]  ;;  %v229_v8 = vld [vmem:[%s1946_s10 + $0x8] sm:$0x77] }
   0xf   : > { %934 = vrot.lane.b32.xlu2 %v880_v6, %s1871_s24  ;;  %v238_v10 = vperm.slane %v228_v7, 2  ;;  %v239_v11 = vperm.slane %v228_v7, 6  ;;  %v240_v12 = vperm.slane %v229_v8, 2  ;;  %v241_v13 = vperm.slane %v229_v8, 6 }
  0x11   : > { %v246_v14 = vperm.slane %v238_v10, 2  ;;  %v247_v15 = vperm.slane %v239_v11, 2  ;;  %v248_v16 = vperm.slane %v240_v12, 2  ;;  %v249_v17 = vperm.slane %v241_v13, 2 }
  0x15   : > { %1748 = vset.pattern.permute.xlu0 %v1872_v3  ;;  %932 = vrot.lane.b32.xlu1 %v879_v5, %s1871_s24 }
  0x16   : > { %255 = vperm.xlu0 %1748, %v230_v0  }
  0x17   : > { %936 = vrot.lane.b32.xlu2 %v881_v4, %s1871_s24 }
  0x1d   : > { %899 = vperm.xlu1 %1749, %v881_v4  }
  0x1e   : > { %1076 = vperm.xlu0 %1748, %v881_v4  }
  0x1f   : > { %894 = vperm.xlu2 %1750, %v880_v6  }
  0x25   : > { %889 = vperm.xlu1 %1749, %v879_v5  }
  0x26   : > { %1752 = vset.pattern.permute.xlu0 %v1870_v2 }
  0x27   : > { %884 = vperm.xlu0 %1752, %v878_v1   ;;  %1751 = vset.pattern.permute.xlu2 %v1872_v3 }
  0x28   : > { %1072 = vperm.xlu2 %1751, %v880_v6   ;;  %v1878_v6 = vmov 1326507024  }
  0x2d   : > { %1753 = vset.pattern.permute.xlu1 %v1872_v3  ;;  %v1877_v3 = vmov 920167782  }
  0x2e   : > { %1068 = vperm.xlu1 %1753, %v879_v5  }
  0x36   : > { %1064 = vperm.xlu1 %1753, %v878_v1  }
  0x7f   : > { %v234_v9 = vpop.permute.xlu0 %233 }
  0x80   : > { %v250_v18 = vmul.f32 %v246_v14, %v234_v9  ;;  %v251_v19 = vmul.f32 %v247_v15, %v234_v9  ;;  %v252_v20 = vmul.f32 %v248_v16, %v234_v9  ;;  %v253_v21 = vmul.f32 %v249_v17, %v234_v9 }
  0x88   : > { %v256_v22 = vpop.permute.xlu0 %255 }
  0x89   : > { %v1952_v23 = vadd.f32 %v256_v22, %v250_v18  ;;  %v1954_v24 = vadd.f32 %v256_v22, %v251_v19  ;;  %v1956_v25 = vadd.f32 %v256_v22, %v252_v20  ;;  %v1958_v26 = vadd.f32 %v256_v22, %v253_v21 }
  0x8b   : > { %v265_v27 = vand.u32 2139095040, %v1952_v23  ;;  %v419_v28 = vand.u32 2139095040, %v1954_v24  ;;  %v573_v29 = vand.u32 2139095040, %v1956_v25  ;;  %v727_v30 = vand.u32 2139095040, %v1958_v26 }
  0x8c   : > { %v262_v31 = vand.u32 2147483647, %v1952_v23  ;;  %v416_v42 = vand.u32 2147483647, %v1954_v24 }
  0x8d   : > { %v266_v32 = vshrl.u32 %v265_v27, 23  ;;  %v420_v33 = vshrl.u32 %v419_v28, 23  ;;  %v574_v34 = vshrl.u32 %v573_v29, 23  ;;  %v728_v37 = vshrl.u32 %v727_v30, 23 }
  0x8e   : > { %v269_v38 = vand.u32 8388607, %v262_v31  ;;  %v1970_v48 = vand.u32 8388607, %v416_v42 }
  0x8f   : > { %v1658_v35 = vadd.s32 4294967169, %v266_v32  ;;  %v1661_v36 = vadd.s32 4294967169, %v420_v33  ;;  %v1664_v41 = vadd.s32 4294967169, %v574_v34  ;;  %v1667_v43 = vadd.s32 4294967169, %v728_v37 }
  0x90   : > { %v270_v44 = vor.u32 8388608, %v269_v38  ;;  %v424_v11 = vor.u32 8388608, %v1970_v48 }
  0x91   : > { %v272_v39 = vadd.s32 1, %v1658_v35  ;;  %v426_v40 = vadd.s32 1, %v1661_v36  ;;  %v580_v50 = vadd.s32 1, %v1664_v41  ;;  %v1972_v51 = vadd.s32 1, %v1667_v43 }
  0x92   : > { %v1974_v52 = vshll.u32 %v270_v44, 8 }
  0x93   : > { %vm273_vm0 = vcmp.gt.s32.totalorder %v272_v39, 0  ;;  %vm427_vm1 = vcmp.gt.s32.totalorder %v426_v40, 0  ;;  %vm581_vm2 = vcmp.gt.s32.totalorder %v580_v50, 0  ;;  %vm735_vm11 = vcmp.gt.s32.totalorder %v1972_v51, 0 }
  0x94   : > { %v274_v45 = vsel %vm273_vm0, %v272_v39, 0  ;;  %v428_v47 = vsel %vm427_vm1, %v426_v40, 0  ;;  %v311_v29 = vand.u32 65535, %v1974_v52  ;;  %v312_v30 = vshrl.u32 %v1974_v52, 16 }
  0x95   : > { %v276_v46 = vand.u32 31, %v274_v45  ;;  %v1976_v53 = vshrl.u32 %v274_v45, 5  ;;  %v1978_v54 = vand.u32 31, %v428_v47  ;;  %v2013_v36 = vshrl.u32 %v428_v47, 5 }
  0x96   : > { %v2016_v37 = vsel %vm581_vm2, %v580_v50, 0  ;;  %vm264_vm1 = vcmp.lt.s32.totalorder %v1952_v23, 0 }
  0x97   : > { %v277_v49 = vsub.s32 32, %v276_v46  ;;  %v279_v56 = vshll.u32 %v1873_v55, %v276_v46  ;;  %v282_v58 = vshll.u32 %v1874_v57, %v276_v46  ;;  %v285_v62 = vshll.u32 %v1875_v60, %v276_v46 }
  0x98   : > { %v288_v1 = vshll.u32 %v1876_v63, %v276_v46  ;;  %v291_v5 = vshll.u32 %v1877_v3, %v276_v46  ;;  %vm294_vm3 = vcmp.lt.s32.totalorder %v1976_v53, 1  ;;  %v1993_v14 = vsub.s32 32, %v1978_v54 }
  0x99   : > { %v280_v59 = vshrl.u32 %v1874_v57, %v277_v49  ;;  %v283_v61 = vshrl.u32 %v1875_v60, %v277_v49  ;;  %v286_v0 = vshrl.u32 %v1876_v63, %v277_v49  ;;  %v289_v4 = vshrl.u32 %v1877_v3, %v277_v49 }
  0x9a   : > { %v292_v7 = vshrl.u32 %v1878_v6, %v277_v49  ;;  %vm297_vm4 = vcmp.lt.s32.totalorder %v1976_v53, 4  ;;  %v278_v17 = vshrl.u32 %v1873_v55, %v277_v49  ;;  %vm296_vm5 = vcmp.lt.s32.totalorder %v1976_v53, 3 }
  0x9b   : > { %v281_v8 = vor.u32 %v280_v59, %v279_v56  ;;  %v284_v9 = vor.u32 %v283_v61, %v282_v58  ;;  %v287_v10 = vor.u32 %v286_v0, %v285_v62  ;;  %v290_v12 = vor.u32 %v289_v4, %v288_v1 }
  0x9c   : > { %v293_v13 = vor.u32 %v292_v7, %v291_v5  ;;  %vm295_vm6 = vcmp.lt.s32.totalorder %v1976_v53, 2  ;;  %v433_v43 = vshll.u32 %v1873_v55, %v1978_v54  ;;  %v434_v44 = vshrl.u32 %v1874_v57, %v1993_v14 }
  0x9d   : > { %v302_v15 = vsel %vm294_vm3, %v281_v8, %v284_v9  ;;  %v306_v16 = vsel %vm294_vm3, %v284_v9, %v287_v10  ;;  %v303_v18 = vsel %vm297_vm4, %v290_v12, 920167782  ;;  %v299_v20 = vsel %vm297_vm4, %v287_v10, 2102212464 }
  0x9e   : > { %v307_v19 = vsel %vm297_vm4, %v293_v13, 1326507024  ;;  %v304_v21 = vsel %vm296_vm5, %v287_v10, %v303_v18  ;;  %v298_v38 = vsel %vm294_vm3, %v278_v17, %v281_v8  ;;  %v300_v39 = vsel %vm296_vm5, %v284_v9, %v299_v20 }
  0x9f   : > { %v308_v22 = vsel %vm296_vm5, %v290_v12, %v307_v19  ;;  %v305_v27 = vsel %vm295_vm6, %v302_v15, %v304_v21  ;;  %v436_v47 = vshll.u32 %v1874_v57, %v1978_v54  ;;  %v437_v49 = vshrl.u32 %v1875_v60, %v1993_v14 }
  0xa0   : > { %v309_v28 = vsel %vm295_vm6, %v306_v16, %v308_v22  ;;  %v335_v34 = vand.u32 65535, %v305_v27  ;;  %v336_v35 = vshrl.u32 %v305_v27, 16  ;;  %v2031_v10 = vor.u32 %v434_v44, %v433_v43 }
  0xa1   : > { %v313_v32 = vand.u32 65535, %v309_v28  ;;  %v314_v33 = vshrl.u32 %v309_v28, 16  ;;  %v440_v15 = vshrl.u32 %v1876_v63, %v1993_v14  ;;  %v2037_v18 = vor.u32 %v437_v49, %v436_v47 }
  0xa2   : > { %v338_v45 = vmul.u32 %v336_v35, %v311_v29  ;;  %v339_v46 = vmul.u32 %v335_v34, %v312_v30  ;;  %v337_v59 = vmul.u32 %v335_v34, %v311_v29  ;;  %v340_v0 = vmul.u32 %v336_v35, %v312_v30 }
  0xa3   : > { %v316_v40 = vmul.u32 %v314_v33, %v311_v29  ;;  %v317_v41 = vmul.u32 %v313_v32, %v312_v30  ;;  %v315_v50 = vmul.u32 %v313_v32, %v311_v29  ;;  %v318_v56 = vmul.u32 %v314_v33, %v312_v30 }
  0xa4   : > { %v341_v1 = vshll.u32 %v338_v45, 16  ;;  %v342_v5 = vshrl.u32 %v338_v45, 16  ;;  %v343_v7 = vshll.u32 %v339_v46, 16  ;;  %v439_v21 = vshll.u32 %v1875_v60, %v1978_v54 }
  0xa5   : > { %v319_v58 = vshll.u32 %v316_v40, 16  ;;  %v320_v61 = vshrl.u32 %v316_v40, 16  ;;  %v321_v62 = vshll.u32 %v317_v41, 16  ;;  %v442_v22 = vshll.u32 %v1876_v63, %v1978_v54 }
  0xa6   : > { %vm345_vm8 = vc.u32 %v337_v59, %v341_v1  ;;  %v347_v9 = vadd.s32 %v341_v1, %v337_v59  ;;  %v443_v28 = vshrl.u32 %v1877_v3, %v1993_v14  ;;  %v445_v29 = vshll.u32 %v1877_v3, %v1978_v54 }
  0xa7   : > { %vm323_vm7 = vc.u32 %v315_v50, %v319_v58  ;;  %v325_v4 = vadd.s32 %v319_v58, %v315_v50  ;;  %v346_v13 = vsel %vm345_vm8, 1, %v1870_v2  ;;  %v446_v30 = vshrl.u32 %v1878_v6, %v1993_v14 }
  0xa8   : > { %v324_v8 = vsel %vm323_vm7, 1, %v1870_v2  ;;  %v348_v17 = vadd.s32 %v346_v13, %v340_v0  ;;  %vm349_vm10 = vc.u32 %v347_v9, %v343_v7  ;;  %v322_v32 = vshrl.u32 %v317_v41, 16 }
  0xa9   : > { %v326_v12 = vadd.s32 %v324_v8, %v318_v56  ;;  %vm327_vm9 = vc.u32 %v325_v4, %v321_v62  ;;  %v350_v20 = vsel %vm349_vm10, 1, %v1870_v2  ;;  %v344_v34 = vshrl.u32 %v339_v46, 16 }
  0xaa   : > { %v328_v16 = vsel %vm327_vm9, 1, %v1870_v2  ;;  %v352_v27 = vadd.s32 %v350_v20, %v348_v17  ;;  %v441_v35 = vor.u32 %v440_v15, %v439_v21  ;;  %v444_v43 = vor.u32 %v443_v28, %v442_v22 }
  0xab   : > { %v330_v19 = vadd.s32 %v328_v16, %v326_v12  ;;  %v447_v44 = vor.u32 %v446_v30, %v445_v29  ;;  %vm448_vm12 = vcmp.lt.s32.totalorder %v2013_v36, 1  ;;  %v2054_v47 = vadd.s32 %v347_v9, %v343_v7 }
  0xac   : > { %v353_v40 = vadd.s32 %v352_v27, %v342_v5  ;;  %vm451_vm13 = vcmp.lt.s32.totalorder %v2013_v36, 4  ;;  %v456_v54 = vsel %vm448_vm12, %v2031_v10, %v2037_v18  ;;  %v301_v41 = vsel %vm295_vm6, %v298_v38, %v300_v39 }
  0xad   : > { %v331_v33 = vadd.s32 %v330_v19, %v320_v61  ;;  %vm450_vm14 = vcmp.lt.s32.totalorder %v2013_v36, 3  ;;  %v457_v49 = vsel %vm451_vm13, %v444_v43, 920167782  ;;  %vm449_vm0 = vcmp.lt.s32.totalorder %v2013_v36, 2 }
  0xae   : > { %v354_v46 = vadd.s32 %v353_v40, %v344_v34  ;;  %v458_v50 = vsel %vm450_vm14, %v441_v35, %v457_v49  ;;  %v460_v56 = vsel %vm448_vm12, %v2037_v18, %v441_v35  ;;  %v461_v39 = vsel %vm451_vm13, %v447_v44, 1326507024 }
  0xaf   : > { %v2052_v45 = vadd.s32 %v331_v33, %v322_v32  ;;  %v459_v38 = vsel %vm449_vm0, %v456_v54, %v458_v50  ;;  %v2080_v58 = vshll.u32 %v424_v11, 8  ;;  %v355_v59 = vmul.u32 %v1974_v52, %v301_v41 }
  0xb0   : > { %v358_v53 = vadd.s32 1, %v354_v46  ;;  %v462_v61 = vsel %vm450_vm14, %v444_v43, %v461_v39  ;;  %v489_v62 = vand.u32 65535, %v459_v38  ;;  %v490_v0 = vshrl.u32 %v459_v38, 16 }
  0xb1   : > { %vm357_vm15 = vc.u32 %v2052_v45, %v2054_v47  ;;  %v463_v4 = vsel %vm449_vm0, %v460_v56, %v462_v61  ;;  %v465_v5 = vand.u32 65535, %v2080_v58  ;;  %v466_v7 = vshrl.u32 %v2080_v58, 16 }
  0xb2   : > { %v359_v1 = vsel %vm357_vm15, %v358_v53, %v354_v46  ;;  %v467_v9 = vand.u32 65535, %v463_v4  ;;  %v468_v48 = vshrl.u32 %v463_v4, 16  ;;  %v570_v11 = vand.u32 2147483647, %v1956_v25 }
  0xb3   : > { %v360_v8 = vadd.s32 %v359_v1, %v355_v59  ;;  %v2093_v52 = vsel %vm735_vm11, %v1972_v51, 0  ;;  %v432_v12 = vshrl.u32 %v1873_v55, %v1993_v14  ;;  %v492_v13 = vmul.u32 %v490_v0, %v465_v5 }
  0xb4   : > { %v493_v15 = vmul.u32 %v489_v62, %v466_v7  ;;  %v2098_v16 = vshrl.u32 %v2016_v37, 5  ;;  %v470_v19 = vmul.u32 %v468_v48, %v465_v5  ;;  %v471_v20 = vmul.u32 %v467_v9, %v466_v7 }
  0xb5   : > { %v361_v17 = vadd.s32 536870912, %v360_v8  ;;  %v2101_v21 = vand.u32 31, %v2016_v37  ;;  %v452_v22 = vsel %vm448_vm12, %v432_v12, %v2031_v10  ;;  %v491_v51 = vmul.u32 %v489_v62, %v465_v5 }
  0xb6   : > { %v495_v27 = vshll.u32 %v492_v13, 16  ;;  %v453_v14 = vsel %vm451_vm13, %v441_v35, 2102212464  ;;  %v469_v29 = vmul.u32 %v467_v9, %v465_v5  ;;  %v473_v30 = vshll.u32 %v470_v19, 16 }
  0xb7   : > { %v362_v28 = vshrl.u32 %v361_v17, 30  ;;  %v472_v32 = vmul.u32 %v468_v48, %v466_v7  ;;  %v497_v33 = vshll.u32 %v493_v15, 16  ;;  %v475_v40 = vshll.u32 %v471_v20, 16 }
  0xb8   : > { %vm499_vm2 = vc.u32 %v491_v51, %v495_v27  ;;  %v501_v34 = vadd.s32 %v495_v27, %v491_v51  ;;  %vm477_vm3 = vc.u32 %v469_v29, %v473_v30  ;;  %v479_v43 = vadd.s32 %v473_v30, %v469_v29 }
  0xb9   : > { %v363_v37 = vshll.u32 %v362_v28, 30  ;;  %v478_v10 = vsel %vm477_vm3, 1, %v1870_v2  ;;  %v494_v44 = vmul.u32 %v490_v0, %v466_v7  ;;  %v500_v54 = vsel %vm499_vm2, 1, %v1870_v2 }
  0xba   : > { %vm503_vm4 = vc.u32 %v501_v34, %v497_v33  ;;  %v454_v35 = vsel %vm450_vm14, %v2037_v18, %v453_v14  ;;  %v480_v46 = vadd.s32 %v478_v10, %v472_v32  ;;  %vm481_vm5 = vc.u32 %v479_v43, %v475_v40 }
  0xbb   : > { %v364_v41 = vsub.s32 %v360_v8, %v363_v37  ;;  %v2115_v49 = vsub.s32 32, %v2101_v21  ;;  %v482_v50 = vsel %vm481_vm5, 1, %v1870_v2  ;;  %v502_v56 = vadd.s32 %v500_v54, %v494_v44 }
  0xbc   : > { %v504_v53 = vsel %vm503_vm4, 1, %v1870_v2  ;;  %v386_v39 = vsub.s32 4, %v362_v28  ;;  %v484_v59 = vadd.s32 %v482_v50, %v480_v46  ;;  %v455_v61 = vsel %vm449_vm0, %v452_v22, %v454_v35 }
  0xbd   : > { %vm365_vm6 = vcmp.lt.s32.totalorder %v364_v41, 0  ;;  %v366_v38 = vsub.s32 0, %v364_v41  ;;  %v474_v62 = vshrl.u32 %v470_v19, 16  ;;  %v496_v0 = vshrl.u32 %v492_v13, 16 }
  0xbe   : > { %v506_v18 = vadd.s32 %v504_v53, %v502_v56  ;;  %v356_v1 = vadd.s32 %v2054_v47, %v2052_v45  ;;  %v476_v5 = vshrl.u32 %v471_v20, 16  ;;  %v577_v7 = vand.u32 8388607, %v570_v11 }
  0xbf   : > { %v367_v4 = vsel %vm365_vm6, %v366_v38, %v364_v41  ;;  %v485_v9 = vadd.s32 %v484_v59, %v474_v62  ;;  %v498_v48 = vshrl.u32 %v493_v15, 16  ;;  %v387_v17 = vsel %vm264_vm1, %v386_v39, %v362_v28 }
  0xc0   : > { %v368_v8 = vclz %v367_v4  ;;  %v507_v12 = vadd.s32 %v506_v18, %v496_v0  ;;  %v2127_v36 = vadd.s32 %v501_v34, %v497_v33  ;;  %v509_v13 = vmul.u32 %v2080_v58, %v455_v61 }
  0xc1   : > { %v587_v19 = vshll.u32 %v1873_v55, %v2101_v21  ;;  %vm2134_vm7 = vcmp.le.f32.partialorder %v262_v31, 0.7853982  ;;  %v2138_v20 = vadd.s32 %v485_v9, %v476_v5  ;;  %v588_v22 = vshrl.u32 %v1874_v57, %v2115_v49 }
  0xc2   : > { %v1659_v47 = vadd.s32 4294967294, %v368_v8  ;;  %v508_v15 = vadd.s32 %v507_v12, %v498_v48  ;;  %v591_v51 = vshrl.u32 %v1875_v60, %v2115_v49  ;;  %v594_v58 = vshrl.u32 %v1876_v63, %v2115_v49 }
  0xc3   : > { %v596_v27 = vshll.u32 %v1876_v63, %v2101_v21  ;;  %v597_v31 = vshrl.u32 %v1877_v3, %v2115_v49  ;;  %vm511_vm9 = vc.u32 %v2138_v20, %v2127_v36  ;;  %v590_v14 = vshll.u32 %v1874_v57, %v2101_v21 }
  0xc4   : > { %vm1660_vm8 = vcmp.lt.s32.totalorder %v1659_v47, 0  ;;  %v512_v28 = vadd.s32 1, %v508_v15  ;;  %v593_v30 = vshll.u32 %v1875_v60, %v2101_v21  ;;  %v600_v33 = vshrl.u32 %v1878_v6, %v2115_v49 }
  0xc5   : > { %v371_v29 = vsel %vm1660_vm8, 0, %v1659_v47  ;;  %v598_v32 = vor.u32 %v597_v31, %v596_v27  ;;  %v599_v43 = vshll.u32 %v1877_v3, %v2101_v21  ;;  %v589_v44 = vor.u32 %v588_v22, %v587_v19 }
  0xc6   : > { %v372_v34 = vsub.s32 32, %v371_v29  ;;  %v376_v37 = vsub.s32 4294967266, %v371_v29  ;;  %v513_v40 = vsel %vm511_vm9, %v512_v28, %v508_v15  ;;  %v592_v54 = vor.u32 %v591_v51, %v590_v14 }
  0xc7   : > { %v514_v10 = vadd.s32 %v513_v40, %v509_v13  ;;  %v595_v35 = vor.u32 %v594_v58, %v593_v30  ;;  %v373_v46 = vshll.u32 %v364_v41, %v371_v29  ;;  %v601_v53 = vor.u32 %v600_v33, %v599_v43 }
  0xc8   : > { %v374_v50 = vshrl.u32 %v356_v1, %v372_v34  ;;  %v377_v56 = vadd.s32 127, %v376_v37  ;;  %v2161_v38 = vand.u32 31, %v2093_v52  ;;  %v578_v59 = vor.u32 8388608, %v577_v7 }
  0xc9   : > { %v515_v39 = vadd.s32 536870912, %v514_v10  ;;  %vm605_vm10 = vcmp.lt.s32.totalorder %v2098_v16, 4  ;;  %vm602_vm11 = vcmp.lt.s32.totalorder %v2098_v16, 1  ;;  %v389_v41 = vsel %vm2134_vm7, 0, %v387_v17 }
  0xca   : > { %v375_v61 = vor.u32 %v374_v50, %v373_v46  ;;  %v378_v62 = vshll.u32 %v377_v56, 23  ;;  %v611_v21 = vsel %vm605_vm10, %v598_v32, 920167782  ;;  %vm604_vm12 = vcmp.lt.s32.totalorder %v2098_v16, 3 }
  0xcb   : > { %v2169_v0 = vshrl.u32 %v515_v39, 30  ;;  %v614_v18 = vsel %vm602_vm11, %v592_v54, %v595_v35  ;;  %v610_v4 = vsel %vm602_vm11, %v589_v44, %v592_v54  ;;  %v612_v5 = vsel %vm604_vm12, %v595_v35, %v611_v21 }
  0xcc   : > { %v379_v1 = vor.u32 4788187, %v378_v62  ;;  %v615_v7 = vsel %vm605_vm10, %v601_v53, 1326507024  ;;  %vm603_vm13 = vcmp.lt.s32.totalorder %v2098_v16, 2  ;;  %v2184_v48 = vshll.u32 %v578_v59, 8 }
  0xcd   : > { %v517_v8 = vshll.u32 %v2169_v0, 30  ;;  %v616_v9 = vsel %vm604_vm12, %v598_v32, %v615_v7  ;;  %v2187_v12 = vshrl.u32 %v2093_v52, 5  ;;  %v382_v13 = vcvt.s32.f32 %v375_v61 }
  0xce   : > { %v380_v17 = vand.u32 2147483647, %v379_v1  ;;  %v617_v19 = vsel %vm603_vm13, %v614_v18, %v616_v9  ;;  %v2192_v47 = vsub.s32 32, %v2161_v38  ;;  %v2194_v15 = vand.u32 3, %v389_v41 }
  0xcf   : > { %v2196_v22 = vsub.s32 %v514_v10, %v517_v8  ;;  %v2200_v51 = vsel %vm603_vm13, %v610_v4, %v612_v5  ;;  %v619_v52 = vand.u32 65535, %v2184_v48  ;;  %v621_v27 = vand.u32 65535, %v617_v19 }
  0xd0   : > { %v383_v58 = vmul.f32 %v382_v13, %v380_v17  ;;  %v622_v31 = vshrl.u32 %v617_v19, 16  ;;  %v586_v14 = vshrl.u32 %v1873_v55, %v2115_v49  ;;  %v620_v29 = vshrl.u32 %v2184_v48, 16 }
  0xd1   : > { %vm519_vm14 = vcmp.lt.s32.totalorder %v2196_v22, 0  ;;  %v520_v28 = vsub.s32 0, %v2196_v22  ;;  %v510_v32 = vadd.s32 %v2127_v36, %v2138_v20  ;;  %v607_v33 = vsel %vm605_vm10, %v595_v35, 2102212464 }
  0xd2   : > { %v384_v30 = vxor.u32 2147483648, %v383_v58  ;;  %v624_v34 = vmul.u32 %v622_v31, %v619_v52  ;;  %v606_v40 = vsel %vm602_vm11, %v586_v14, %v589_v44  ;;  %v2215_v43 = vmul.u32 %v621_v27, %v620_v29 }
  0xd3   : > { %v521_v37 = vsel %vm519_vm14, %v520_v28, %v2196_v22  ;;  %v644_v10 = vshrl.u32 %v2200_v51, 16  ;;  %v623_v50 = vmul.u32 %v621_v27, %v619_v52  ;;  %v608_v20 = vsel %vm604_vm12, %v592_v54, %v607_v33 }
  0xd4   : > { %v385_v49 = vsel %vm264_vm1, %v384_v30, %v383_v58  ;;  %v522_v46 = vclz %v521_v37  ;;  %v627_v56 = vshll.u32 %v624_v34, 16  ;;  %v626_v35 = vmul.u32 %v622_v31, %v620_v29 }
  0xd5   : > { %v2223_v36 = vsel %vm2134_vm7, %v1952_v23, %v385_v49  ;;  %v643_v44 = vand.u32 65535, %v2200_v51  ;;  %v540_v61 = vsub.s32 4, %v2169_v0  ;;  %v629_v62 = vshll.u32 %v2215_v43, 16 }
  0xd6   : > { %v390_v53 = vmul.f32 %v2223_v36, %v2223_v36  ;;  %v1662_v39 = vadd.s32 4294967294, %v522_v46  ;;  %vm631_vm15 = vc.u32 %v623_v50, %v627_v56  ;;  %v633_v59 = vadd.s32 %v627_v56, %v623_v50 }
  0xd7   : > { %v632_v45 = vsel %vm631_vm15, 1, %v1870_v2  ;;  %v646_v21 = vmul.u32 %v644_v10, %v619_v52  ;;  %vm418_vm0 = vcmp.lt.s32.totalorder %v1954_v24, 0  ;;  %v647_v4 = vmul.u32 %v643_v44, %v620_v29 }
  0xd8   : > { %v391_v41 = vmul.f32 -0.001358992, %v390_v53  ;;  %v398_v18 = vmul.f32 -0.00019511016, %v390_v53  ;;  %vm1663_vm1 = vcmp.lt.s32.totalorder %v1662_v39, 0  ;;  %v634_v54 = vadd.s32 %v632_v45, %v626_v35 }
  0xd9   : > { %v525_v1 = vsel %vm1663_vm1, 0, %v1662_v39  ;;  %vm635_vm2 = vc.u32 %v633_v59, %v629_v62  ;;  %v649_v5 = vshll.u32 %v646_v21, 16  ;;  %v645_v17 = vmul.u32 %v643_v44, %v619_v52 }
  0xda   : > { %v392_v7 = vadd.f32 0.041655596, %v391_v41  ;;  %v399_v8 = vadd.f32 0.008332121, %v398_v18  ;;  %v526_v9 = vsub.s32 32, %v525_v1  ;;  %v527_v13 = vshll.u32 %v2196_v22, %v525_v1 }
  0xdb   : > { %v530_v19 = vsub.s32 4294967266, %v525_v1  ;;  %v628_v51 = vshrl.u32 %v624_v34, 16  ;;  %v636_v58 = vsel %vm635_vm2, 1, %v1870_v2  ;;  %vm2238_vm3 = vcmp.le.f32.partialorder %v416_v42, 0.7853982 }
  0xdc   : > { %v393_v27 = vmul.f32 %v392_v7, %v390_v53  ;;  %v400_v31 = vmul.f32 %v399_v8, %v390_v53  ;;  %v528_v28 = vshrl.u32 %v510_v32, %v526_v9  ;;  %v638_v14 = vadd.s32 %v636_v58, %v634_v54 }
  0xdd   : > { %v531_v33 = vadd.s32 127, %v530_v19  ;;  %v651_v37 = vshll.u32 %v647_v4, 16  ;;  %vm653_vm4 = vc.u32 %v645_v17, %v649_v5  ;;  %v655_v52 = vadd.s32 %v649_v5, %v645_v17 }
  0xde   : > { %v394_v49 = vadd.f32 -0.4999988, %v393_v27  ;;  %v401_v22 = vadd.f32 -0.16666654, %v400_v31  ;;  %v639_v46 = vadd.s32 %v638_v14, %v628_v51  ;;  %v648_v34 = vmul.u32 %v644_v10, %v620_v29 }
  0xdf   : > { %v529_v50 = vor.u32 %v528_v28, %v527_v13  ;;  %v532_v56 = vshll.u32 %v531_v33, 23  ;;  %v654_v35 = vsel %vm653_vm4, 1, %v1870_v2  ;;  %vm657_vm5 = vc.u32 %v655_v52, %v651_v37 }
  0xe0   : > { %v395_v32 = vmul.f32 %v394_v49, %v390_v53  ;;  %v402_v44 = vmul.f32 %v401_v22, %v390_v53  ;;  %vm407_vm6 = vcmp.lt.s32.totalorder %v2194_v15, 2  ;;  %v609_v42 = vsel %vm603_vm13, %v606_v40, %v608_v20 }
  0xe1   : > { %v630_v39 = vshrl.u32 %v2215_v43, 16  ;;  %vm405_vm7 = vweird.f32 %v1952_v23  ;;  %v533_v59 = vor.u32 4788187, %v532_v56  ;;  %v541_v29 = vsel %vm418_vm0, %v540_v61, %v2169_v0 }
  0xe2   : > { %v656_v10 = vadd.s32 %v654_v35, %v648_v34  ;;  %v658_v62 = vsel %vm657_vm5, 1, %v1870_v2  ;;  %v396_v45 = vadd.f32 1.0, %v395_v32  ;;  %v403_v41 = vadd.f32 1.0, %v402_v44 }
  0xe3   : > { %v2252_v53 = vadd.s32 %v639_v46, %v630_v39  ;;  %v650_v18 = vshrl.u32 %v646_v21, 16  ;;  %v534_v54 = vand.u32 2147483647, %v533_v59  ;;  %v536_v16 = vcvt.s32.f32 %v529_v50 }
  0xe4   : > { %v660_v40 = vadd.s32 %v658_v62, %v656_v10  ;;  %v724_v43 = vand.u32 2147483647, %v1958_v26  ;;  %v404_v20 = vmul.f32 %v403_v41, %v2223_v36  ;;  %vm408_vm8 = vcmp.eq.s32.totalorder %v2194_v15, 0 }
  0xe5   : > { %v412_v1 = vxor.u32 2147483648, %v396_v45  ;;  %v2257_v5 = vadd.s32 %v655_v52, %v651_v37  ;;  %vm411_vm9 = vcmp.eq.s32.totalorder %v2194_v15, 2  ;;  %v537_v0 = vmul.f32 %v536_v16, %v534_v54 }
  0xe6   : > { %v652_v61 = vshrl.u32 %v647_v4, 16  ;;  %v661_v7 = vadd.s32 %v660_v40, %v650_v18  ;;  %v409_v8 = vxor.u32 2147483648, %v404_v20  ;;  %v543_v21 = vsel %vm2238_vm3, 0, %v541_v29 }
  0xe7   : > { %v663_v9 = vmul.u32 %v2184_v48, %v609_v42  ;;  %vm665_vm10 = vc.u32 %v2252_v53, %v2257_v5  ;;  %v538_v36 = vxor.u32 2147483648, %v537_v0  ;;  %v731_v13 = vand.u32 8388607, %v724_v43 }
  0xe8   : > { %v662_v17 = vadd.s32 %v661_v7, %v652_v61  ;;  %v741_v19 = vshll.u32 %v1873_v55, %v2161_v38  ;;  %v410_v51 = vsel %vm408_vm8, %v396_v45, %v409_v8  ;;  %v413_v4 = vsel %vm411_vm9, %v412_v1, %v404_v20 }
  0xe9   : > { %v742_v58 = vshrl.u32 %v1874_v57, %v2192_v47  ;;  %v745_v27 = vshrl.u32 %v1875_v60, %v2192_v47  ;;  %v414_v48 = vsel %vm407_vm6, %v410_v51, %v413_v4  ;;  %v539_v31 = vsel %vm418_vm0, %v538_v36, %v537_v0 }
  0xea   : > { %v666_v28 = vadd.s32 1, %v662_v17  ;;  %v748_v14 = vshrl.u32 %v1876_v63, %v2192_v47  ;;  %v415_v33 = vsel %vm405_vm7, nan, %v414_v48  ;;  %v542_v37 = vsel %vm2238_vm3, %v1954_v24, %v539_v31 }
  0xeb   : > { %v744_v52 = vshll.u32 %v1874_v57, %v2161_v38  ;;  %v747_v15 = vshll.u32 %v1875_v60, %v2161_v38  ;;  %962 = vmatpush.msra.mxu0 %v415_v33  ;;  %v544_v49 = vmul.f32 %v542_v37, %v542_v37  ;;  %v750_v23 = vshll.u32 %v1876_v63, %v2161_v38 }
  0xec   : > { %v667_v22 = vsel %vm665_vm10, %v666_v28, %v662_v17  ;;  %v751_v46 = vshrl.u32 %v1877_v3, %v2192_v47  ;;  %v753_v57 = vshll.u32 %v1877_v3, %v2161_v38  ;;  %v754_v60 = vshrl.u32 %v1878_v6, %v2192_v47 }
  0xed   : > { %v668_v30 = vadd.s32 %v667_v22, %v663_v9  ;;  %v2295_v34 = vor.u32 %v745_v27, %v744_v52  ;;  %v545_v50 = vmul.f32 -0.001358992, %v544_v49  ;;  %v552_v56 = vmul.f32 -0.00019511016, %v544_v49 }
  0xee   : > { %v2301_v35 = vor.u32 %v748_v14, %v747_v15  ;;  %v752_v32 = vor.u32 %v751_v46, %v750_v23  ;;  %v2303_v42 = vor.u32 %v742_v58, %v741_v19  ;;  %v755_v63 = vor.u32 %v754_v60, %v753_v57 }
  0xef   : > { %v669_v44 = vadd.s32 536870912, %v668_v30  ;;  %v546_v39 = vadd.f32 0.041655596, %v545_v50  ;;  %v553_v59 = vadd.f32 0.008332121, %v552_v56  ;;  %v560_v29 = vand.u32 3, %v543_v21 }
  0xf0   : > { %vm759_vm11 = vcmp.lt.s32.totalorder %v2187_v12, 4  ;;  %v732_v3 = vor.u32 8388608, %v731_v13  ;;  %vm756_vm12 = vcmp.lt.s32.totalorder %v2187_v12, 1  ;;  %vm758_vm13 = vcmp.lt.s32.totalorder %v2187_v12, 3 }
  0xf1   : > { %v2306_v10 = vshrl.u32 %v669_v44, 30  ;;  %v765_v6 = vsel %vm759_vm11, %v752_v32, 920167782  ;;  %v547_v38 = vmul.f32 %v546_v39, %v544_v49  ;;  %v554_v62 = vmul.f32 %v553_v59, %v544_v49 }
  0xf2   : > { %v768_v45 = vsel %vm756_vm12, %v2295_v34, %v2301_v35  ;;  %v764_v18 = vsel %vm756_vm12, %v2303_v42, %v2295_v34  ;;  %v766_v54 = vsel %vm758_vm13, %v2301_v35, %v765_v6  ;;  %v769_v16 = vsel %vm759_vm11, %v755_v63, 1326507024 }
  0xf3   : > { %v671_v41 = vshll.u32 %v2306_v10, 30  ;;  %v548_v40 = vadd.f32 -0.4999988, %v547_v38  ;;  %v555_v20 = vadd.f32 -0.16666654, %v554_v62  ;;  %vm757_vm14 = vcmp.lt.s32.totalorder %v2187_v12, 2 }
  0xf4   : > { %v770_v1 = vsel %vm758_vm13, %v752_v32, %v769_v16  ;;  %v2331_v7 = vshll.u32 %v732_v3, 8  ;;  %v767_v9 = vsel %vm757_vm14, %v764_v18, %v766_v54  ;;  %vm559_vm15 = vweird.f32 %v1954_v24 }
  0xf5   : > { %v672_v0 = vsub.s32 %v668_v30, %v671_v41  ;;  %v771_v61 = vsel %vm757_vm14, %v768_v45, %v770_v1  ;;  %v549_v8 = vmul.f32 %v548_v40, %v544_v49  ;;  %v556_v21 = vmul.f32 %v555_v20, %v544_v49 }
  0xf6   : > { %vm561_vm0 = vcmp.lt.s32.totalorder %v560_v29, 2  ;;  %v775_v19 = vand.u32 65535, %v771_v61  ;;  %v776_v51 = vshrl.u32 %v771_v61, 16  ;;  %v773_v58 = vand.u32 65535, %v2331_v7 }
  0xf7   : > { %vm673_vm1 = vcmp.lt.s32.totalorder %v672_v0, 0  ;;  %v674_v36 = vsub.s32 0, %v672_v0  ;;  %v550_v17 = vadd.f32 1.0, %v549_v8  ;;  %v557_v13 = vadd.f32 1.0, %v556_v21 }
  0xf8   : > { %v774_v27 = vshrl.u32 %v2331_v7, 16  ;;  %v797_v48 = vand.u32 65535, %v767_v9  ;;  %vm562_vm2 = vcmp.eq.s32.totalorder %v560_v29, 0  ;;  %vm565_vm3 = vcmp.eq.s32.totalorder %v560_v29, 2 }
  0xf9   : > { %v675_v4 = vsel %vm673_vm1, %v674_v36, %v672_v0  ;;  %v558_v31 = vmul.f32 %v557_v13, %v542_v37  ;;  %v566_v28 = vxor.u32 2147483648, %v550_v17  ;;  %v778_v33 = vmul.u32 %v776_v51, %v773_v58 }
  0xfa   : > { %v676_v14 = vclz %v675_v4  ;;  %v779_v52 = vmul.u32 %v775_v19, %v774_v27  ;;  %v798_v15 = vshrl.u32 %v767_v9, 16  ;;  %v664_v22 = vadd.s32 %v2257_v5, %v2252_v53 }
  0xfb   : > { %v563_v49 = vxor.u32 2147483648, %v558_v31  ;;  %v777_v46 = vmul.u32 %v775_v19, %v773_v58  ;;  %v567_v30 = vsel %vm565_vm3, %v566_v28, %v558_v31  ;;  %v780_v57 = vmul.u32 %v776_v51, %v774_v27 }
  0xfc   : > { %v1665_v23 = vadd.s32 4294967294, %v676_v14  ;;  %v781_v60 = vshll.u32 %v778_v33, 16  ;;  %v799_v50 = vmul.u32 %v797_v48, %v773_v58  ;;  %v783_v37 = vshll.u32 %v779_v52, 16 }
  0xfd   : > { %v564_v56 = vsel %vm562_vm2, %v550_v17, %v563_v49  ;;  %v800_v32 = vmul.u32 %v798_v15, %v773_v58  ;;  %v801_v5 = vmul.u32 %v797_v48, %v774_v27  ;;  %v782_v54 = vshrl.u32 %v778_v33, 16 }
  0xfe   : > { %vm1666_vm4 = vcmp.lt.s32.totalorder %v1665_v23, 0  ;;  %v568_v44 = vsel %vm561_vm0, %v564_v56, %v567_v30  ;;  %vm785_vm5 = vc.u32 %v777_v46, %v781_v60  ;;  %v787_v39 = vadd.s32 %v781_v60, %v777_v46 }
  0xff   : > { %v679_v63 = vsel %vm1666_vm4, 0, %v1665_v23  ;;  %v569_v59 = vsel %vm559_vm15, nan, %v568_v44  ;;  %v786_v38 = vsel %vm785_vm5, 1, %v1870_v2  ;;  %v803_v62 = vshll.u32 %v800_v32, 16 }
 0x100   : > { %v680_v3 = vsub.s32 32, %v679_v63  ;;  %v684_v53 = vsub.s32 4294967266, %v679_v63  ;;  %991 = vmatpush.msra.mxu1 %v569_v59  ;;  %v681_v6 = vshll.u32 %v672_v0, %v679_v63  ;;  %vm789_vm6 = vc.u32 %v787_v39, %v783_v37 }
 0x101   : > { %v788_v18 = vadd.s32 %v786_v38, %v780_v57  ;;  %v790_v29 = vsel %vm789_vm6, 1, %v1870_v2  ;;  %v802_v16 = vmul.u32 %v798_v15, %v774_v27  ;;  %vm807_vm7 = vc.u32 %v799_v50, %v803_v62 }
 0x102   : > { %v682_v45 = vshrl.u32 %v664_v22, %v680_v3  ;;  %v685_v41 = vadd.s32 127, %v684_v53  ;;  %v808_v1 = vsel %vm807_vm7, 1, %v1870_v2  ;;  %v805_v61 = vshll.u32 %v801_v5, 16 }
 0x103   : > { %v792_v20 = vadd.s32 %v790_v29, %v788_v18  ;;  %v809_v8 = vadd.s32 %v803_v62, %v799_v50  ;;  %v810_v0 = vadd.s32 %v808_v1, %v802_v16  ;;  %v740_v36 = vshrl.u32 %v1873_v55, %v2192_v47 }
 0x104   : > { %v683_v40 = vor.u32 %v682_v45, %v681_v6  ;;  %v686_v24 = vshll.u32 %v685_v41, 23  ;;  %v761_v17 = vsel %vm759_vm11, %v2301_v35, 2102212464  ;;  %v784_v51 = vshrl.u32 %v779_v52, 16 }
 0x105   : > { %v793_v9 = vadd.s32 %v792_v20, %v782_v54  ;;  %vm811_vm8 = vc.u32 %v809_v8, %v805_v61  ;;  %v804_v58 = vshrl.u32 %v800_v32, 16  ;;  %v760_v31 = vsel %vm756_vm12, %v740_v36, %v2303_v42  ;;  %v2383_v36 = vpop.permute.xlu1 %930 }
 0x106   : > { %v687_v21 = vor.u32 4788187, %v686_v24  ;;  %v690_v19 = vcvt.s32.f32 %v683_v40  ;;  %v812_v4 = vsel %vm811_vm8, 1, %v1870_v2  ;;  %v762_v55 = vsel %vm758_vm13, %v2295_v34, %v761_v17 }
 0x107   : > { %v814_v27 = vadd.s32 %v812_v4, %v810_v0  ;;  %v794_v47 = vadd.s32 %v793_v9, %v784_v51  ;;  %v806_v28 = vshrl.u32 %v801_v5, 16  ;;  %v813_v33 = vadd.s32 %v809_v8, %v805_v61 }
 0x108   : > { %v688_v13 = vand.u32 2147483647, %v687_v21  ;;  %vm572_vm9 = vcmp.lt.s32.totalorder %v1956_v25, 0  ;;  %v763_v2 = vsel %vm757_vm14, %v760_v31, %v762_v55  ;;  %vm2363_vm10 = vcmp.le.f32.partialorder %v570_v11, 0.7853982 }
 0x109   : > { %v815_v35 = vadd.s32 %v814_v27, %v804_v58  ;;  %vm819_vm11 = vc.u32 %v794_v47, %v813_v33  ;;  %v817_v12 = vmul.u32 %v2331_v7, %v763_v2  ;;  %v694_v11 = vsub.s32 4, %v2306_v10  ;;  %v935_v2 = vpop.permute.xlu2 %934 }
 0x10a   : > { %v691_v48 = vmul.f32 %v690_v19, %v688_v13  ;;  %vm713_vm0 = vweird.f32 %v1956_v25  ;;  %v818_v0 = vadd.s32 %v813_v33, %v794_v47  ;;  %vm938_vm2 = vcmask 64512  }
 0x10b   : > { %v816_v52 = vadd.s32 %v815_v35, %v806_v28  ;;  %v695_v63 = vsel %vm572_vm9, %v694_v11, %v2306_v10  ;;  %1670 = vmatmul.msk.f32.vlgmr.msra.gmra.mxu0 %vm938_vm2, %v2383_v36  ;;  %1674 = vmatmul.msk.f32.vlgmr.msra.gmra.mxu1 %vm938_vm2, %v2383_v36  ;;  %vm726_vm3 = vcmp.lt.s32.totalorder %v1958_v26, 0  ;;  %vm2394_vm4 = vcmp.le.f32.partialorder %v724_v43, 0.7853982  ;;  %v1856_v43 = vld [vmem:[%s2676_s2] sm:$0xff] }
 0x10c   : > { %v692_v14 = vxor.u32 2147483648, %v691_v48  ;;  %v697_v3 = vsel %vm2363_vm10, 0, %v695_v63  ;;  %vm867_vm8 = vweird.f32 %v1958_v26 }
 0x10d   : > { %v820_v49 = vadd.s32 1, %v816_v52  ;;  %v714_v41 = vand.u32 3, %v697_v3  ;;  %v933_v31 = vpop.permute.xlu1 %932 }
 0x10e   : > { %v693_v34 = vsel %vm572_vm9, %v692_v14, %v691_v48  ;;  %v1879_v14 = vmov 10   ;;  %vm1195_vm9 = vcmask 261120  }
 0x10f   : > { %v696_v42 = vsel %vm2363_vm10, %v1956_v25, %v693_v34  ;;  %v821_v23 = vsel %vm819_vm11, %v820_v49, %v816_v52  ;;  %vm716_vm13 = vcmp.eq.s32.totalorder %v714_v41, 0  ;;  %vm719_vm14 = vcmp.eq.s32.totalorder %v714_v41, 2  ;;  %1756 = vset.pattern.permute.xlu1 %v1879_v14  ;;  %1755 = vset.pattern.permute.xlu0 %v1879_v14  ;;  %v1857_v52 = vld [vmem:[%s2676_s2 + $0x8] sm:$0xff] }
 0x110   : > { %v698_v22 = vmul.f32 %v696_v42, %v696_v42  ;;  %v822_v57 = vadd.s32 %v821_v23, %v817_v12  ;;  %vm715_vm15 = vcmp.lt.s32.totalorder %v714_v41, 2  ;;  %1124 = vperm.xlu1 %1756, %v1856_v43   ;;  %1128 = vperm.xlu0 %1755, %v1857_v52  }
 0x111   : > { %1754 = vset.pattern.permute.xlu2 %v1879_v14 }
 0x112   : > { %v699_v46 = vmul.f32 -0.001358992, %v698_v22  ;;  %v706_v30 = vmul.f32 -0.00019511016, %v698_v22  ;;  %v823_v56 = vadd.s32 536870912, %v822_v57 }
 0x113   : > { %1671 = vmatmul.msk.f32.gmra.mxu0 %vm938_vm2, %v933_v31  ;;  %1675 = vmatmul.msk.f32.gmra.mxu1 %vm938_vm2, %v933_v31 }
 0x114   : > { %v700_v60 = vadd.f32 0.041655596, %v699_v46  ;;  %v707_v50 = vadd.f32 0.008332121, %v706_v30  ;;  %v2374_v44 = vshrl.u32 %v823_v56, 30 }
 0x116   : > { %v701_v37 = vmul.f32 %v700_v60, %v698_v22  ;;  %v708_v32 = vmul.f32 %v707_v50, %v698_v22  ;;  %v825_v7 = vshll.u32 %v2374_v44, 30  ;;  %v848_v49 = vsub.s32 4, %v2374_v44 }
 0x118   : > { %v702_v39 = vadd.f32 -0.4999988, %v701_v37  ;;  %v709_v59 = vadd.f32 -0.16666654, %v708_v32  ;;  %v826_v6 = vsub.s32 %v822_v57, %v825_v7  ;;  %v849_v30 = vsel %vm726_vm3, %v848_v49, %v2374_v44  ;;  %v1859_v37 = vld [vmem:[%s2676_s2 + $0x10] sm:$0xff]  ;;  %v937_v32 = vpop.permute.xlu2 %936 }
 0x119   : > { %v851_v60 = vsel %vm2394_vm4, 0, %v849_v30 }
 0x11a   : > { %v703_v53 = vmul.f32 %v702_v39, %v698_v22  ;;  %v710_v5 = vmul.f32 %v709_v59, %v698_v22  ;;  %vm827_vm12 = vcmp.lt.s32.totalorder %v826_v6, 0  ;;  %v828_v45 = vsub.s32 0, %v826_v6 }
 0x11b   : > { %1672 = vmatmul.msk.f32.gmra.mxu0 %vm938_vm2, %v935_v2  ;;  %1676 = vmatmul.msk.f32.gmra.mxu1 %vm938_vm2, %v935_v2  ;;  %v868_v59 = vand.u32 3, %v851_v60 }
 0x11c   : > { %v704_v38 = vadd.f32 1.0, %v703_v53  ;;  %v711_v62 = vadd.f32 1.0, %v710_v5  ;;  %v829_v54 = vsel %vm827_vm12, %v828_v45, %v826_v6 }
 0x11d   : > { %v830_v16 = vclz %v829_v54  ;;  %vm870_vm5 = vcmp.eq.s32.totalorder %v868_v59, 0  ;;  %vm873_vm6 = vcmp.eq.s32.totalorder %v868_v59, 2  ;;  %vm869_vm7 = vcmp.lt.s32.totalorder %v868_v59, 2 }
 0x11e   : > { %v712_v18 = vmul.f32 %v711_v62, %v696_v42  ;;  %v720_v29 = vxor.u32 2147483648, %v704_v38  ;;  %v1858_v42 = vld [vmem:[%s2676_s2 + $0x18] sm:$0xff]  ;;  %v2436_v62 = vpop.permute.xlu1 %899 }
 0x11f   : > { %v1668_v40 = vadd.s32 4294967294, %v830_v16  ;;  %1136 = vperm.xlu2 %1754, %v1858_v42   ;;  %v1860_v16 = vld [vmem:[%s1946_s10] sm:$0x77] }
 0x120   : > { %v717_v10 = vxor.u32 2147483648, %v712_v18  ;;  %v721_v20 = vsel %vm719_vm14, %v720_v29, %v712_v18  ;;  %v2440_v41 = vpop.permute.xlu2 %894  ;;  %v2444_v29 = vpop.permute.xlu0 %1076 }
 0x121   : > { %vm1669_vm1 = vcmp.lt.s32.totalorder %v1668_v40, 0 }
 0x122   : > { %v718_v24 = vsel %vm716_vm13, %v704_v38, %v717_v10  ;;  %v833_v8 = vsel %vm1669_vm1, 0, %v1668_v40  ;;  %v902_v10 = vperm.slane %v1860_v16, 0 }
 0x123   : > { %v722_v1 = vsel %vm715_vm15, %v718_v24, %v721_v20  ;;  %v834_v21 = vsub.s32 32, %v833_v8  ;;  %v838_v9 = vsub.s32 4294967266, %v833_v8  ;;  %v835_v17 = vshll.u32 %v826_v6, %v833_v8  ;;  %1673 = vmatmul.msk.f32.gmra.mxu0 %vm938_vm2, %v937_v32  ;;  %1677 = vmatmul.msk.f32.gmra.mxu1 %vm938_vm2, %v937_v32 }
 0x124   : > { %v723_v61 = vsel %vm713_vm0, nan, %v722_v1  ;;  %v910_v20 = vperm.slane %v902_v10, 0 }
 0x125   : > { %1020 = vmatpush.msra.mxu2 %v723_v61  ;;  %v836_v13 = vshrl.u32 %v818_v0, %v834_v21  ;;  %v839_v19 = vadd.s32 127, %v838_v9  ;;  %v1079_v61 = vperm.slane %v1860_v16, 1 }
 0x126   : > { %1678 = vmatmul.msk.f32.vlgmr.msra.gmra.mxu2 %vm938_vm2, %v2383_v36  ;;  %v2438_v45 = vpop.permute.xlu1 %889 }
 0x127   : > { %v837_v51 = vor.u32 %v836_v13, %v835_v17  ;;  %v840_v4 = vshll.u32 %v839_v19, 23  ;;  %1132 = vperm.xlu2 %1754, %v1859_v37   ;;  %v1087_v17 = vperm.slane %v1079_v61, 1  ;;  %v1080_v13 = vperm.slane %v1860_v16, 5  ;;  %v2459_v19 = vld [vmem:[%s1946_s10 + $0x8] sm:$0x77] }
 0x128   : > { %v2451_v24 = vpop.permute.xlu2 %1072  ;;  %v2453_v1 = vpop.permute.xlu0 %884 }
 0x129   : > { %v841_v58 = vor.u32 4788187, %v840_v4  ;;  %v844_v27 = vcvt.s32.f32 %v837_v51  ;;  %v914_v9 = vmul.f32 %v910_v20, %v2453_v1  ;;  %v1081_v51 = vperm.slane %v2459_v19, 1 }
 0x12a   : > { %v903_v4 = vperm.slane %v1860_v16, 4 }
 0x12b   : > { %v842_v25 = vand.u32 2147483647, %v841_v58  ;;  %v1089_v47 = vperm.slane %v1081_v51, 1 }
 0x12c   : > { %v911_v14 = vperm.slane %v903_v4, 0 }
 0x12d   : > { %v845_v48 = vmul.f32 %v844_v27, %v842_v25  ;;  %v1105_v30 = vmul.f32 %v1089_v47, %v2444_v29  ;;  %v1101_v51 = vmul.f32 %v1089_v47, %v2451_v24 }
 0x12e   : > { %1679 = vmatmul.msk.f32.gmra.mxu2 %vm938_vm2, %v933_v31  ;;  %v2446_v54 = vpop.permute.xlu1 %1068  ;;  %v919_v60 = vmul.f32 %v911_v14, %v2438_v45  ;;  %v927_v16 = vmul.f32 %v911_v14, %v2436_v62 }
 0x12f   : > { %v846_v55 = vxor.u32 2147483648, %v845_v48 }
 0x131   : > { %v847_v28 = vsel %vm726_vm3, %v846_v55, %v845_v48  ;;  %v904_v48 = vperm.slane %v2459_v19, 0  ;;  %v1088_v55 = vperm.slane %v1080_v13, 1 }
 0x132   : > { %v850_v35 = vsel %vm2394_vm4, %v1958_v26, %v847_v28 }
 0x133   : > { %v852_v33 = vmul.f32 %v850_v35, %v850_v35 }
 0x135   : > { %v853_v15 = vmul.f32 -0.001358992, %v852_v33  ;;  %v860_v34 = vmul.f32 -0.00019511016, %v852_v33 }
 0x136   : > { %1680 = vmatmul.msk.f32.gmra.mxu2 %vm938_vm2, %v935_v2  ;;  %v2455_v21 = vpop.permute.xlu1 %1064 }
 0x137   : > { %v854_v22 = vadd.f32 0.041655596, %v853_v15  ;;  %v861_v12 = vadd.f32 0.008332121, %v860_v34  ;;  %v1091_v27 = vmul.f32 %v1087_v17, %v2455_v21  ;;  %v1095_v15 = vmul.f32 %v1087_v17, %v2446_v54 }
 0x139   : > { %v855_v23 = vmul.f32 %v854_v22, %v852_v33  ;;  %v862_v46 = vmul.f32 %v861_v12, %v852_v33  ;;  %v1099_v22 = vmul.f32 %v1087_v17, %v2451_v24  ;;  %v1092_v12 = vmul.f32 %v1088_v55, %v2455_v21 }
 0x13b   : > { %v856_v57 = vadd.f32 -0.4999988, %v855_v23  ;;  %v863_v11 = vadd.f32 -0.16666654, %v862_v46  ;;  %v1103_v23 = vmul.f32 %v1087_v17, %v2444_v29  ;;  %v1104_v46 = vmul.f32 %v1088_v55, %v2444_v29 }
 0x13d   : > { %v857_v50 = vmul.f32 %v856_v57, %v852_v33  ;;  %v864_v56 = vmul.f32 %v863_v11, %v852_v33  ;;  %v922_v33 = vmul.f32 %v910_v20, %v2440_v41  ;;  %v915_v57 = vmul.f32 %v911_v14, %v2453_v1 }
 0x13e   : > { %1681 = vmatmul.msk.f32.gmra.mxu2 %vm938_vm2, %v937_v32  ;;  %v1093_v11 = vmul.f32 %v1089_v47, %v2455_v21 }
 0x13f   : > { %v858_v63 = vadd.f32 1.0, %v857_v50  ;;  %v865_v39 = vadd.f32 1.0, %v864_v56  ;;  %v923_v50 = vmul.f32 %v911_v14, %v2440_v41 }
 0x141   : > { %v866_v7 = vmul.f32 %v865_v39, %v850_v35  ;;  %v874_v44 = vxor.u32 2147483648, %v858_v63 }
 0x143   : > { %v871_v3 = vxor.u32 2147483648, %v866_v7  ;;  %v875_v5 = vsel %vm873_vm6, %v874_v44, %v866_v7 }
 0x145   : > { %v872_v53 = vsel %vm870_vm5, %v858_v63, %v871_v3  ;;  %v1100_v3 = vmul.f32 %v1088_v55, %v2451_v24 }
 0x146   : > { %v876_v6 = vsel %vm869_vm7, %v872_v53, %v875_v5  ;;  %v1096_v5 = vmul.f32 %v1088_v55, %v2446_v54 }
 0x147   : > { %v877_v38 = vsel %vm867_vm8, nan, %v876_v6 }
 0x148   : > { %1049 = vmatpush.msra.mxu3 %v877_v38  ;;  %v926_v38 = vmul.f32 %v910_v20, %v2436_v62 }
 0x149   : > { %1682 = vmatmul.msk.f32.vlgmr.msra.gmra.mxu3 %vm938_vm2, %v2383_v36 }
 0x151   : > { %1683 = vmatmul.msk.f32.gmra.mxu3 %vm938_vm2, %v933_v31  ;;  %v918_v31 = vmul.f32 %v910_v20, %v2438_v45 }
 0x159   : > { %1684 = vmatmul.msk.f32.gmra.mxu3 %vm938_vm2, %v935_v2  ;;  %v912_v2 = vperm.slane %v904_v48, 0 }
 0x15b   : > { %v916_v37 = vmul.f32 %v912_v2, %v2453_v1  ;;  %v924_v63 = vmul.f32 %v912_v2, %v2440_v41  ;;  %v920_v59 = vmul.f32 %v912_v2, %v2438_v45  ;;  %v928_v17 = vmul.f32 %v912_v2, %v2436_v62 }
 0x161   : > { %1685 = vmatmul.msk.f32.gmra.mxu3 %vm938_vm2, %v937_v32 }
 0x179   : > { %v2462_v58 = vpop.permute.xlu2 %1136 }
 0x181   : > { %v2487_v53 = vpop.permute.xlu2 %1132 }
 0x182   : > { %v2469_v42 = vpop.permute.xlu1 %1124  ;;  %v2483_v39 = vpop.permute.xlu0 %1128 }
 0x188   : > { %v964_v18 = vpop.f32.mrf.mxu0  ;;  %v2442_v26 = vpop.f32.mrf.mxu1 }
 0x189   : > { %v965_v25 = vadd.f32 %v964_v18, %v914_v9  ;;  %v1097_v9 = vmul.f32 %v1089_v47, %v2446_v54  ;;  %v994_v48 = vadd.f32 %v2442_v26, %v915_v57 }
 0x18b   : > { %v1107_v43 = vadd.f32 %v1091_v27, %v965_v25 }
 0x18d   : > { %v1139_v56 = vadd.f32 %v2469_v42, %v1107_v43 }
 0x18f   : > { %1760 = vtanh.f32 %v1139_v56 }
 0x190   : > { %v967_v8 = vpop.f32.mrf.mxu0  ;;  %v996_v0 = vpop.f32.mrf.mxu1 }
 0x191   : > { %v968_v52 = vadd.f32 %v967_v8, %v918_v31  ;;  %v997_v61 = vadd.f32 %v996_v0, %v919_v60 }
 0x193   : > { %v1111_v32 = vadd.f32 %v1095_v15, %v968_v52  ;;  %v1112_v14 = vadd.f32 %v1096_v5, %v997_v61  ;;  %v1108_v52 = vadd.f32 %v1092_v12, %v994_v48 }
 0x195   : > { %v1143_v13 = vadd.f32 %v2483_v39, %v1111_v32  ;;  %v1140_v12 = vadd.f32 %v2469_v42, %v1108_v52 }
 0x197   : > { %1762 = vtanh.f32 %v1143_v13 }
 0x198   : > { %v970_v28 = vpop.f32.mrf.mxu0  ;;  %v999_v35 = vpop.f32.mrf.mxu1 }
 0x199   : > { %v971_v49 = vadd.f32 %v970_v28, %v922_v33  ;;  %v1000_v44 = vadd.f32 %v999_v35, %v923_v50 }
 0x19b   : > { %v1115_v7 = vadd.f32 %v1099_v22, %v971_v49  ;;  %v1116_v20 = vadd.f32 %v1100_v3, %v1000_v44  ;;  %v1144_v22 = vadd.f32 %v2483_v39, %v1112_v14 }
 0x19d   : > { %v1147_v31 = vadd.f32 %v2487_v53, %v1115_v7  ;;  %v1148_v26 = vadd.f32 %v2487_v53, %v1116_v20  ;;  %v2513_v7 = vld [vmem:[%s2677_s3] sm:$0xff] }
 0x19f   : > { %1764 = vtanh.f32 %v1147_v31 }
 0x1a0   : > { %v973_v18 = vpop.f32.mrf.mxu0  ;;  %v1002_v10 = vpop.f32.mrf.mxu1 }
 0x1a1   : > { %v974_v4 = vadd.f32 %v973_v18, %v926_v38  ;;  %v1003_v25 = vadd.f32 %v1002_v10, %v927_v16  ;;  %v1082_v38 = vperm.slane %v2459_v19, 5  ;;  %v2526_v10 = vld [vmem:[%s2677_s3 + $0x8] sm:$0xff] }
 0x1a3   : > { %v1119_v28 = vadd.f32 %v1103_v23, %v974_v4  ;;  %v1120_v35 = vadd.f32 %v1104_v46, %v1003_v25  ;;  %v1761_v46 = vpop.eup %1760 }
 0x1a5   : > { %v1151_v47 = vadd.f32 %v2462_v58, %v1119_v28  ;;  %v1152_v2 = vadd.f32 %v2462_v58, %v1120_v35 }
 0x1a7   : > { %1766 = vtanh.f32 %v1151_v47  ;;  %v2592_v47 = vld [vmem:[%s2677_s3 + $0x20] sm:$0xff] }
 0x1a8   : > { %1768 = vtanh.f32 %v1152_v2 }
 0x1a9   : > { %v2449_v40 = vpop.f32.mrf.mxu2 }
 0x1aa   : > { %v1023_v0 = vadd.f32 %v2449_v40, %v916_v37 }
 0x1b1   : > { %v1025_v36 = vpop.f32.mrf.mxu2 }
 0x1b2   : > { %v1026_v8 = vadd.f32 %v1025_v36, %v920_v59 }
 0x1b4   : > { %v1113_v43 = vadd.f32 %v1097_v9, %v1026_v8  ;;  %v1090_v8 = vperm.slane %v1082_v38, 1 }
 0x1b6   : > { %v1145_v23 = vadd.f32 %v2483_v39, %v1113_v43  ;;  %v1102_v25 = vmul.f32 %v1090_v8, %v2451_v24  ;;  %v1094_v24 = vmul.f32 %v1090_v8, %v2455_v21  ;;  %v2583_v43 = vld [vmem:[%s2677_s3 + $0x30] sm:$0xff] }
 0x1b9   : > { %v1028_v34 = vpop.f32.mrf.mxu2 }
 0x1ba   : > { %v1029_v6 = vadd.f32 %v1028_v34, %v924_v63  ;;  %v1109_v34 = vadd.f32 %v1093_v11, %v1023_v0 }
 0x1bc   : > { %v1117_v36 = vadd.f32 %v1101_v51, %v1029_v6  ;;  %v1141_v57 = vadd.f32 %v2469_v42, %v1109_v34  ;;  %v905_v6 = vperm.slane %v2459_v19, 4  ;;  %v1098_v19 = vmul.f32 %v1090_v8, %v2446_v54  ;;  %v1173_v54 = vld [vmem:[%s2677_s3 + $0x10] sm:$0xff] }
 0x1bd   : > { %v1880_v51 = vmov 32  }
 0x1be   : > { %v1149_v40 = vadd.f32 %v2487_v53, %v1117_v36  ;;  %v913_v16 = vperm.slane %v905_v6, 0  ;;  %1759 = vset.pattern.permute.xlu0 %v1880_v51  ;;  %1758 = vset.pattern.permute.xlu1 %v1880_v51  ;;  %v1174_v36 = vld [vmem:[%s2677_s3 + $0x18] sm:$0xff] }
 0x1bf   : > { %1177 = vperm.xlu0 %1759, %v2513_v7   ;;  %1757 = vset.pattern.permute.xlu2 %v1880_v51 }
 0x1c0   : > { %v925_v61 = vmul.f32 %v913_v16, %v2440_v41  ;;  %v917_v9 = vmul.f32 %v913_v16, %v2453_v1  ;;  %v929_v41 = vmul.f32 %v913_v16, %v2436_v62  ;;  %v1106_v1 = vmul.f32 %v1090_v8, %v2444_v29  ;;  %1187 = vperm.xlu1 %1758, %v1173_v54  }
 0x1c1   : > { %v1031_v27 = vpop.f32.mrf.mxu2  ;;  %1192 = vperm.xlu2 %1757, %v1174_v36  }
 0x1c2   : > { %v1032_v55 = vadd.f32 %v1031_v27, %v928_v17  ;;  %v921_v17 = vmul.f32 %v913_v16, %v2438_v45 }
 0x1c4   : > { %v1121_v33 = vadd.f32 %v1105_v30, %v1032_v55  ;;  %v1763_v30 = vpop.eup %1762 }
 0x1c5   : > { %v1765_v11 = vpop.eup %1764 }
 0x1c6   : > { %v1153_v15 = vadd.f32 %v2462_v58, %v1121_v33  ;;  %v1767_v60 = vpop.eup %1766  ;;  %v2576_v33 = vld [vmem:[%s2677_s3 + $0x28] sm:$0xff] }
 0x1c7   : > { %v1769_v50 = vpop.eup %1768  ;;  %1216 = vmatpush.msrb.mxu0 %v1767_v60 }
 0x1c8   : > { %1770 = vtanh.f32 %v1153_v15  ;;  %1245 = vmatpush.msrb.mxu1 %v1769_v50 }
 0x1c9   : > { %1772 = vtanh.f32 %v1148_v26  ;;  %1217 = vmatpush.msrb.mxu0 %v1765_v11  ;;  %1182 = vperm.xlu2 %1757, %v2526_v10  }
 0x1ca   : > { %1774 = vtanh.f32 %v1149_v40 }
 0x1cb   : > { %1776 = vtanh.f32 %v1144_v22  ;;  %1218 = vmatpush.msrb.mxu0 %v1763_v30 }
 0x1cc   : > { %v2504_v49 = vpop.f32.mrf.mxu3  ;;  %1778 = vtanh.f32 %v1145_v23 }
 0x1cd   : > { %1780 = vtanh.f32 %v1140_v12  ;;  %1219 = vmatpush.msrb.mxu0 %v1761_v46  ;;  %v1052_v27 = vadd.f32 %v2504_v49, %v917_v9 }
 0x1ce   : > { %v1771_v56 = vpop.eup %1770  ;;  %1782 = vtanh.f32 %v1141_v57  ;;  %1686 = vmatmul.msk.f32.vlgmr.msrb.gmra.mxu0 %vm1195_vm9, %v2513_v7 }
 0x1cf   : > { %v1773_v37 = vpop.eup %1772  ;;  %1274 = vmatpush.msrb.mxu2 %v1771_v56  ;;  %v1110_v55 = vadd.f32 %v1094_v24, %v1052_v27 }
 0x1d0   : > { %v1775_v63 = vpop.eup %1774  ;;  %1246 = vmatpush.msrb.mxu1 %v1773_v37 }
 0x1d1   : > { %v1777_v59 = vpop.eup %1776  ;;  %1275 = vmatpush.msrb.mxu2 %v1775_v63  ;;  %v1142_v28 = vadd.f32 %v2469_v42, %v1110_v55  ;;  %1353 = vperm.xlu2 %1757, %v2583_v43  }
 0x1d2   : > { %v1779_v44 = vpop.eup %1778  ;;  %1247 = vmatpush.msrb.mxu1 %v1777_v59 }
 0x1d3   : > { %v1781_v3 = vpop.eup %1780  ;;  %1276 = vmatpush.msrb.mxu2 %v1779_v44 }
 0x1d4   : > { %v1054_v32 = vpop.f32.mrf.mxu3  ;;  %v1783_v5 = vpop.eup %1782  ;;  %1248 = vmatpush.msrb.mxu1 %v1781_v3 }
 0x1d5   : > { %1690 = vmatmul.msk.f32.vlgmr.msrb.gmra.mxu1 %vm1195_vm9, %v2513_v7  ;;  %1277 = vmatpush.msrb.mxu2 %v1783_v5  ;;  %v1055_v4 = vadd.f32 %v1054_v32, %v921_v17 }
 0x1d6   : > { %1694 = vmatmul.msk.f32.vlgmr.msrb.gmra.mxu2 %vm1195_vm9, %v2513_v7  ;;  %1687 = vmatmul.msk.f32.gmra.mxu0 %vm1195_vm9, %v2526_v10 }
 0x1d7   : > { %v1114_v20 = vadd.f32 %v1098_v19, %v1055_v4 }
 0x1d9   : > { %v1146_v21 = vadd.f32 %v2483_v39, %v1114_v20  ;;  %v2567_v39 = vld [vmem:[%s2678_s4] sm:$0xff]  ;;  %1343 = vperm.xlu2 %1757, %v2592_v47  }
 0x1da   : > { %1504 = vperm.xlu0 %1759, %v2567_v39  }
 0x1dc   : > { %v1057_v18 = vpop.f32.mrf.mxu3 }
 0x1dd   : > { %v1058_v13 = vadd.f32 %v1057_v18, %v925_v61  ;;  %1691 = vmatmul.msk.f32.gmra.mxu1 %vm1195_vm9, %v2526_v10 }
 0x1de   : > { %1695 = vmatmul.msk.f32.gmra.mxu2 %vm1195_vm9, %v2526_v10  ;;  %1688 = vmatmul.msk.f32.gmra.mxu0 %vm1195_vm9, %v1173_v54 }
 0x1df   : > { %v1118_v48 = vadd.f32 %v1102_v25, %v1058_v13 }
 0x1e1   : > { %v1150_v0 = vadd.f32 %v2487_v53, %v1118_v48 }
 0x1e4   : > { %v1060_v45 = vpop.f32.mrf.mxu3 }
 0x1e5   : > { %v1061_v62 = vadd.f32 %v1060_v45, %v929_v41  ;;  %1692 = vmatmul.msk.f32.gmra.mxu1 %vm1195_vm9, %v1173_v54 }
 0x1e6   : > { %1696 = vmatmul.msk.f32.gmra.mxu2 %vm1195_vm9, %v1173_v54  ;;  %1689 = vmatmul.msk.f32.gmra.mxu0 %vm1195_vm9, %v1174_v36 }
 0x1e7   : > { %v1122_v31 = vadd.f32 %v1106_v1, %v1061_v62 }
 0x1e9   : > { %v1154_v29 = vadd.f32 %v2462_v58, %v1122_v31  ;;  %v2561_v58 = vld [vmem:[%s2677_s3 + $0x38] sm:$0xff] }
 0x1ea   : > { %1358 = vperm.xlu1 %1758, %v2561_v58  }
 0x1eb   : > { %1784 = vtanh.f32 %v1154_v29 }
 0x1ec   : > { %1786 = vtanh.f32 %v1150_v0 }
 0x1ed   : > { %1788 = vtanh.f32 %v1146_v21  ;;  %1693 = vmatmul.msk.f32.gmra.mxu1 %vm1195_vm9, %v1174_v36 }
 0x1ee   : > { %1790 = vtanh.f32 %v1142_v28  ;;  %1697 = vmatmul.msk.f32.gmra.mxu2 %vm1195_vm9, %v1174_v36 }
 0x1f1   : > { %v1785_v53 = vpop.eup %1784 }
 0x1f2   : > { %1303 = vmatpush.msrb.mxu3 %v1785_v53  ;;  %v1787_v42 = vpop.eup %1786  ;;  %1348 = vperm.xlu1 %1758, %v2576_v33  }
 0x1f3   : > { %v1789_v35 = vpop.eup %1788 }
 0x1f4   : > { %1304 = vmatpush.msrb.mxu3 %v1787_v42  ;;  %v1791_v14 = vpop.eup %1790 }
 0x1f6   : > { %1305 = vmatpush.msrb.mxu3 %v1789_v35 }
 0x1f8   : > { %1306 = vmatpush.msrb.mxu3 %v1791_v14 }
 0x1f9   : > { %1698 = vmatmul.msk.f32.vlgmr.msrb.gmra.mxu3 %vm1195_vm9, %v2513_v7 }
 0x201   : > { %1699 = vmatmul.msk.f32.gmra.mxu3 %vm1195_vm9, %v2526_v10 }
 0x209   : > { %1700 = vmatmul.msk.f32.gmra.mxu3 %vm1195_vm9, %v1173_v54 }
 0x211   : > { %1701 = vmatmul.msk.f32.gmra.mxu3 %vm1195_vm9, %v1174_v36 }
 0x21b   : > { %v2597_v40 = vpop.permute.xlu2 %1192 }
 0x223   : > { %v2603_v57 = vpop.permute.xlu2 %1182 }
 0x231   : > { %v1178_v59 = vpop.permute.xlu0 %1177 }
 0x232   : > { %v2599_v46 = vpop.permute.xlu1 %1187 }
 0x24b   : > { %v1221_v2 = vpop.f32.mrf.mxu0 }
 0x24c   : > { %v1222_v7 = vadd.f32 %v1221_v2, %v1178_v59 }
 0x252   : > { %v1250_v52 = vpop.f32.mrf.mxu1 }
 0x253   : > { %v1224_v26 = vpop.f32.mrf.mxu0  ;;  %v1251_v44 = vadd.f32 %v1250_v52, %v1178_v59  ;;  %v2649_v52 = vpop.permute.xlu2 %1353 }
 0x254   : > { %v1225_v50 = vadd.f32 %v1224_v26, %v2603_v57 }
 0x259   : > { %v1279_v15 = vpop.f32.mrf.mxu2 }
 0x25a   : > { %v1253_v34 = vpop.f32.mrf.mxu1  ;;  %v1280_v17 = vadd.f32 %v1279_v15, %v1178_v59 }
 0x25b   : > { %v1227_v49 = vpop.f32.mrf.mxu0  ;;  %v1254_v32 = vadd.f32 %v1253_v34, %v2603_v57 }
 0x25c   : > { %v1228_v12 = vadd.f32 %v1227_v49, %v2599_v46  ;;  %v2647_v35 = vpop.permute.xlu1 %1358 }
 0x25e   : > { %1792 = vtanh.f32 %v1228_v12 }
 0x261   : > { %v1282_v22 = vpop.f32.mrf.mxu2 }
 0x262   : > { %v1256_v23 = vpop.f32.mrf.mxu1  ;;  %v1283_v8 = vadd.f32 %v1282_v22, %v2603_v57  ;;  %v1344_v22 = vpop.permute.xlu2 %1343 }
 0x263   : > { %v1257_v30 = vadd.f32 %v1256_v23, %v2599_v46  ;;  %v1230_v11 = vpop.f32.mrf.mxu0 }
 0x264   : > { %v1231_v56 = vadd.f32 %v1230_v11, %v2597_v40  ;;  %v1793_v3 = vpop.eup %1792  ;;  %v1349_v34 = vpop.permute.xlu1 %1348 }
 0x265   : > { %1794 = vtanh.f32 %v1257_v30 }
 0x266   : > { %1796 = vtanh.f32 %v1231_v56 }
 0x269   : > { %v1285_v60 = vpop.f32.mrf.mxu2 }
 0x26a   : > { %v1259_v37 = vpop.f32.mrf.mxu1  ;;  %v1286_v18 = vadd.f32 %v1285_v60, %v2599_v46 }
 0x26b   : > { %v1260_v63 = vadd.f32 %v1259_v37, %v2597_v40  ;;  %v1795_v5 = vpop.eup %1794 }
 0x26c   : > { %v1797_v38 = vpop.eup %1796 }
 0x26d   : > { %1798 = vtanh.f32 %v1260_v63  ;;  %1381 = vmatpush.msra.mxu0 %v1797_v38 }
 0x26e   : > { %1800 = vtanh.f32 %v1225_v50 }
 0x26f   : > { %1802 = vtanh.f32 %v1254_v32  ;;  %1382 = vmatpush.msra.mxu0 %v1793_v3 }
 0x270   : > { %1804 = vtanh.f32 %v1222_v7 }
 0x271   : > { %v1288_v6 = vpop.f32.mrf.mxu2  ;;  %1806 = vtanh.f32 %v1251_v44 }
 0x272   : > { %v1289_v16 = vadd.f32 %v1288_v6, %v2597_v40 }
 0x273   : > { %v1799_v10 = vpop.eup %1798 }
 0x274   : > { %v1801_v61 = vpop.eup %1800  ;;  %1410 = vmatpush.msra.mxu1 %v1799_v10  ;;  %1808 = vtanh.f32 %v1289_v16 }
 0x275   : > { %v1803_v9 = vpop.eup %1802  ;;  %1810 = vtanh.f32 %v1286_v18  ;;  %1383 = vmatpush.msra.mxu0 %v1801_v61 }
 0x276   : > { %1411 = vmatpush.msra.mxu1 %v1795_v5  ;;  %v1805_v19 = vpop.eup %1804  ;;  %1812 = vtanh.f32 %v1283_v8 }
 0x277   : > { %v1807_v51 = vpop.eup %1806  ;;  %1384 = vmatpush.msra.mxu0 %v1805_v19  ;;  %1814 = vtanh.f32 %v1280_v17 }
 0x278   : > { %1412 = vmatpush.msra.mxu1 %v1803_v9  ;;  %1706 = vmatmul.msk.f32.vlgmr.msra.gmra.mxu0 %vm1195_vm9, %v2592_v47 }
 0x27a   : > { %v1809_v4 = vpop.eup %1808  ;;  %1413 = vmatpush.msra.mxu1 %v1807_v51 }
 0x27b   : > { %1710 = vmatmul.msk.f32.vlgmr.msra.gmra.mxu1 %vm1195_vm9, %v2592_v47  ;;  %1439 = vmatpush.msra.mxu2 %v1809_v4  ;;  %v1811_v25 = vpop.eup %1810 }
 0x27c   : > { %v1308_v13 = vpop.f32.mrf.mxu3  ;;  %v1813_v41 = vpop.eup %1812 }
 0x27d   : > { %1440 = vmatpush.msra.mxu2 %v1811_v25  ;;  %v1815_v1 = vpop.eup %1814  ;;  %v1309_v20 = vadd.f32 %v1308_v13, %v1178_v59 }
 0x27f   : > { %1441 = vmatpush.msra.mxu2 %v1813_v41 }
 0x280   : > { %1707 = vmatmul.msk.f32.gmra.mxu0 %vm1195_vm9, %v2576_v33 }
 0x281   : > { %1442 = vmatpush.msra.mxu2 %v1815_v1  ;;  %v1505_v1 = vpop.permute.xlu0 %1504 }
 0x282   : > { %1714 = vmatmul.msk.f32.vlgmr.msra.gmra.mxu2 %vm1195_vm9, %v2592_v47 }
 0x283   : > { %1711 = vmatmul.msk.f32.gmra.mxu1 %vm1195_vm9, %v2576_v33 }
 0x284   : > { %v1311_v45 = vpop.f32.mrf.mxu3 }
 0x285   : > { %v1312_v62 = vadd.f32 %v1311_v45, %v2603_v57 }
 0x288   : > { %1708 = vmatmul.msk.f32.gmra.mxu0 %vm1195_vm9, %v2583_v43 }
 0x28a   : > { %1715 = vmatmul.msk.f32.gmra.mxu2 %vm1195_vm9, %v2576_v33 }
 0x28b   : > { %1712 = vmatmul.msk.f32.gmra.mxu1 %vm1195_vm9, %v2583_v43 }
 0x28c   : > { %v1314_v54 = vpop.f32.mrf.mxu3 }
 0x28d   : > { %v1315_v24 = vadd.f32 %v1314_v54, %v2599_v46 }
 0x290   : > { %1709 = vmatmul.msk.f32.gmra.mxu0 %vm1195_vm9, %v2561_v58 }
 0x292   : > { %1716 = vmatmul.msk.f32.gmra.mxu2 %vm1195_vm9, %v2583_v43 }
 0x293   : > { %1713 = vmatmul.msk.f32.gmra.mxu1 %vm1195_vm9, %v2561_v58 }
 0x294   : > { %v1317_v27 = vpop.f32.mrf.mxu3 }
 0x295   : > { %v1318_v48 = vadd.f32 %v1317_v27, %v2597_v40 }
 0x297   : > { %1816 = vtanh.f32 %v1318_v48 }
 0x298   : > { %1818 = vtanh.f32 %v1315_v24 }
 0x299   : > { %1820 = vtanh.f32 %v1312_v62 }
 0x29a   : > { %1822 = vtanh.f32 %v1309_v20  ;;  %1717 = vmatmul.msk.f32.gmra.mxu2 %vm1195_vm9, %v2561_v58 }
 0x29d   : > { %v1817_v31 = vpop.eup %1816 }
 0x29e   : > { %1468 = vmatpush.msra.mxu3 %v1817_v31  ;;  %v1819_v55 = vpop.eup %1818 }
 0x29f   : > { %v1821_v0 = vpop.eup %1820 }
 0x2a0   : > { %1469 = vmatpush.msra.mxu3 %v1819_v55  ;;  %v1823_v29 = vpop.eup %1822 }
 0x2a2   : > { %1470 = vmatpush.msra.mxu3 %v1821_v0 }
 0x2a4   : > { %1471 = vmatpush.msra.mxu3 %v1823_v29 }
 0x2a5   : > { %1718 = vmatmul.msk.f32.vlgmr.msra.gmra.mxu3 %vm1195_vm9, %v2592_v47 }
 0x2ad   : > { %1719 = vmatmul.msk.f32.gmra.mxu3 %vm1195_vm9, %v2576_v33 }
 0x2b5   : > { %1720 = vmatmul.msk.f32.gmra.mxu3 %vm1195_vm9, %v2583_v43 }
 0x2bd   : > { %1721 = vmatmul.msk.f32.gmra.mxu3 %vm1195_vm9, %v2561_v58 }
 0x2f5   : > { %v1386_v36 = vpop.f32.mrf.mxu0 }
 0x2f6   : > { %v1387_v46 = vadd.f32 %v1386_v36, %v1344_v22 }
 0x2f8   : > { %v1415_v21 = vpop.f32.mrf.mxu1 }
 0x2f9   : > { %v1416_v12 = vadd.f32 %v1415_v21, %v1344_v22 }
 0x2fd   : > { %v1389_v28 = vpop.f32.mrf.mxu0 }
 0x2fe   : > { %v1390_v49 = vadd.f32 %v1389_v28, %v1349_v34 }
 0x300   : > { %v1418_v53 = vpop.f32.mrf.mxu1 }
 0x301   : > { %v1419_v23 = vadd.f32 %v1418_v53, %v1349_v34 }
 0x305   : > { %v1444_v42 = vpop.f32.mrf.mxu2  ;;  %v1392_v14 = vpop.f32.mrf.mxu0 }
 0x306   : > { %v1393_v33 = vadd.f32 %v1392_v14, %v2649_v52  ;;  %v1445_v5 = vadd.f32 %v1444_v42, %v1344_v22 }
 0x308   : > { %v1421_v2 = vpop.f32.mrf.mxu1 }
 0x309   : > { %v1422_v58 = vadd.f32 %v1421_v2, %v2649_v52 }
 0x30d   : > { %v1447_v47 = vpop.f32.mrf.mxu2  ;;  %v1395_v26 = vpop.f32.mrf.mxu0 }
 0x30e   : > { %v1396_v43 = vadd.f32 %v1395_v26, %v2647_v35  ;;  %v1448_v3 = vadd.f32 %v1447_v47, %v1349_v34 }
 0x310   : > { %v1424_v15 = vpop.f32.mrf.mxu1  ;;  %1824 = vtanh.f32 %v1396_v43 }
 0x311   : > { %v1425_v40 = vadd.f32 %v1424_v15, %v2647_v35 }
 0x313   : > { %1826 = vtanh.f32 %v1425_v40 }
 0x314   : > { %1828 = vtanh.f32 %v1393_v33 }
 0x315   : > { %1830 = vtanh.f32 %v1422_v58  ;;  %v1450_v30 = vpop.f32.mrf.mxu2 }
 0x316   : > { %1832 = vtanh.f32 %v1390_v49  ;;  %v1825_v57 = vpop.eup %1824  ;;  %v1451_v59 = vadd.f32 %v1450_v30, %v2649_v52 }
 0x317   : > { %1834 = vtanh.f32 %v1419_v23  ;;  %1521 = vmatpush.msrb.mxu0 %v1825_v57 }
 0x318   : > { %1836 = vtanh.f32 %v1387_v46 }
 0x319   : > { %v1827_v11 = vpop.eup %1826  ;;  %1838 = vtanh.f32 %v1416_v12 }
 0x31a   : > { %v1829_v60 = vpop.eup %1828  ;;  %1541 = vmatpush.msrb.mxu1 %v1827_v11 }
 0x31b   : > { %v1831_v50 = vpop.eup %1830  ;;  %1522 = vmatpush.msrb.mxu0 %v1829_v60 }
 0x31c   : > { %v1833_v56 = vpop.eup %1832  ;;  %1542 = vmatpush.msrb.mxu1 %v1831_v50 }
 0x31d   : > { %v1835_v37 = vpop.eup %1834  ;;  %1523 = vmatpush.msrb.mxu0 %v1833_v56  ;;  %v1453_v32 = vpop.f32.mrf.mxu2 }
 0x31e   : > { %v1837_v63 = vpop.eup %1836  ;;  %1543 = vmatpush.msrb.mxu1 %v1835_v37  ;;  %v1454_v7 = vadd.f32 %v1453_v32, %v2647_v35 }
 0x31f   : > { %v1839_v44 = vpop.eup %1838  ;;  %1524 = vmatpush.msrb.mxu0 %v1837_v63 }
 0x320   : > { %1544 = vmatpush.msrb.mxu1 %v1839_v44  ;;  %1722 = vmatmul.msk.f32.vlgmr.msrb.gmra.mxu0 %vm1195_vm9, %v2567_v39  ;;  %1840 = vtanh.f32 %v1454_v7 }
 0x321   : > { %1723 = vmatmul.msk.f32.vlgmr.msrb.gmra.mxu1 %vm1195_vm9, %v2567_v39  ;;  %1842 = vtanh.f32 %v1451_v59 }
 0x322   : > { %1844 = vtanh.f32 %v1448_v3 }
 0x323   : > { %1846 = vtanh.f32 %v1445_v5 }
 0x326   : > { %v1841_v38 = vpop.eup %1840 }
 0x327   : > { %1561 = vmatpush.msrb.mxu2 %v1841_v38  ;;  %v1843_v18 = vpop.eup %1842 }
 0x328   : > { %v1473_v6 = vpop.f32.mrf.mxu3  ;;  %v1845_v16 = vpop.eup %1844 }
 0x329   : > { %1562 = vmatpush.msrb.mxu2 %v1843_v18  ;;  %v1847_v61 = vpop.eup %1846  ;;  %v1474_v51 = vadd.f32 %v1473_v6, %v1344_v22 }
 0x32b   : > { %1563 = vmatpush.msrb.mxu2 %v1845_v16 }
 0x32d   : > { %1564 = vmatpush.msrb.mxu2 %v1847_v61 }
 0x32e   : > { %1724 = vmatmul.msk.f32.vlgmr.msrb.gmra.mxu2 %vm1195_vm9, %v2567_v39 }
 0x330   : > { %v1476_v10 = vpop.f32.mrf.mxu3 }
 0x331   : > { %v1477_v19 = vadd.f32 %v1476_v10, %v1349_v34 }
 0x338   : > { %v1479_v8 = vpop.f32.mrf.mxu3 }
 0x339   : > { %v1480_v17 = vadd.f32 %v1479_v8, %v2649_v52 }
 0x340   : > { %v1482_v9 = vpop.f32.mrf.mxu3 }
 0x341   : > { %v1483_v13 = vadd.f32 %v1482_v9, %v2647_v35 }
 0x343   : > { %1848 = vtanh.f32 %v1483_v13 }
 0x344   : > { %1850 = vtanh.f32 %v1480_v17 }
 0x345   : > { %1852 = vtanh.f32 %v1477_v19 }
 0x346   : > { %1854 = vtanh.f32 %v1474_v51 }
 0x349   : > { %v1849_v4 = vpop.eup %1848 }
 0x34a   : > { %1581 = vmatpush.msrb.mxu3 %v1849_v4  ;;  %v1851_v25 = vpop.eup %1850 }
 0x34b   : > { %v1853_v41 = vpop.eup %1852 }
 0x34c   : > { %1582 = vmatpush.msrb.mxu3 %v1851_v25  ;;  %v1855_v45 = vpop.eup %1854 }
 0x34e   : > { %1583 = vmatpush.msrb.mxu3 %v1853_v41 }
 0x350   : > { %1584 = vmatpush.msrb.mxu3 %v1855_v45 }
 0x351   : > { %1725 = vmatmul.msk.f32.vlgmr.msrb.gmra.mxu3 %vm1195_vm9, %v2567_v39 }
 0x39d   : > { %v1526_v54 = vpop.f32.mrf.mxu0 }
 0x39e   : > { %v1527_v27 = vadd.f32 %v1526_v54, %v1505_v1  ;;  %v1546_v24 = vpop.f32.mrf.mxu1 }
 0x39f   : > { %v1547_v48 = vadd.f32 %v1546_v24, %v1505_v1 }
 0x3a0   : > { %1589 = vst [vmem:[%s226_s17] sm:$0xff] %v1527_v27 }
 0x3a1   : > { %1590 = vst [vmem:[%s226_s17 + $0x8] sm:$0xff] %v1547_v48 }
 0x3b1   : > { %v1566_v62 = vpop.f32.mrf.mxu2 }
 0x3b2   : > { %v1567_v20 = vadd.f32 %v1566_v62, %v1505_v1 }
 0x3b4   : > { %1591 = vst [vmem:[%s226_s17 + $0x10] sm:$0xff] %v1567_v20 }
 0x3d4   : > { %v1586_v31 = vpop.f32.mrf.mxu3 }
 0x3d5   : > { %v1587_v55 = vadd.f32 %v1586_v31, %v1505_v1 }
 0x3d7   : > { %1592 = vst [vmem:[%s226_s17 + $0x18] sm:$0xff] %v1587_v55 }
 0x3d8 PF: > { %s15_s18 = sadd.s32 1, %s1868_s18  }
 0x3d9   : > { %p12_p4 = scmp.ge.s32.totalorder %s15_s18, 4  }
 0x3db   :  { %14 = sbr.rel (!%p12_p4) target bundleno = 1 (0x1), region = 71 }

</bundles_post_ra>
